<compile_context>
chip_gen: v7x
topology: tpu7x:2x2x1
jax: 0.10.0
libtpu: 0.0.40
codegen_flags: <defaults>
</compile_context>

<pallas_src>
import functools

import jax
import jax.numpy as jnp
from jax import lax
from jax.experimental import pallas as pl
from jax.experimental.pallas import tpu as pltpu


def _ru(x, m):
    return ((x + m - 1) // m) * m


def _vmem_limit_bytes():
    """Generation-aware VMEM cap (~3/4 physical: v7x ~48 MiB, v5e/v6e ~96 MiB)."""
    try:
        cap = int(pltpu.get_tpu_info().vmem_capacity_bytes)
    except Exception:
        cap = 64 * 1024 * 1024  # conservative fallback (v7x per-TC size)
    return max(32 * 1024 * 1024, (cap * 3) // 4)


def _layernorm_pad(y, gamma, beta, n_real, eps=1e-5):
    """LayerNorm over the first `n_real` lanes of a zero-padded slab.

    Padded lanes of `y` are exactly zero by construction, so full-width sums
    equal the real-lane moments.  gamma/beta are zero on padded lanes, so the
    padded output lanes stay exactly zero.  E[y^2]-mean^2 keeps the two
    reductions independent (no serial chain).
    """
    inv_n = 1.0 / float(n_real)
    mean = jnp.sum(y, axis=-1, keepdims=True) * inv_n
    m2 = jnp.sum(y * y, axis=-1, keepdims=True) * inv_n
    var = m2 - mean * mean
    return (y - mean) * lax.rsqrt(var + eps) * gamma + beta


# ----------------------------------------------------------------------------
# Fused Enc kernel: grid = (batch tiles ["parallel"], enc2 layers ["arbitrary"])
# ----------------------------------------------------------------------------
def _enc_kernel(x_ref, yprv_ref,
                fpw13_ref, fpb13_ref, fpw2_ref, fpb2_ref, fpA_ref, fpg_ref,
                fpb_ref,
                e1wa_ref, e1wb_ref, e1b13_ref, e1w2_ref, e1b2_ref, e1g_ref,
                e1bb_ref,
                e2w13_ref, e2b13_ref, e2w2_ref, e2b2_ref, e2g_ref, e2bb_ref,
                o_ref, *, cp_pad, hp, hdim, n_enc2, mm_dtype):
    f32 = jnp.float32
    lay = pl.program_id(1)

    @pl.when(lay == 0)
    def _featproj_and_enc1():
        # featproj: block-diagonal-over-time weights, merged lin1|lin3 matmul
        x = x_ref[...]                                        # (tb, xin_pad) bf16
        y = jnp.dot(x, fpw13_ref[...], preferred_element_type=f32) + fpb13_ref[...]
        h = jnp.maximum(y[:, :cp_pad], 0.0)                   # lin1 + ReLU
        z = (jnp.dot(h.astype(mm_dtype), fpw2_ref[...],
                     preferred_element_type=f32)
             + fpb2_ref[...] + y[:, cp_pad:])                 # lin2 + residual
        # grouped (per-timestep) LayerNorm via the block-diagonal averaging
        # matrix A; the two moment matmuls are independent and kept in f32.
        A = fpA_ref[...]
        mean_b = jnp.dot(z, A, preferred_element_type=f32)
        m2_b = jnp.dot(z * z, A, preferred_element_type=f32)
        var_b = m2_b - mean_b * mean_b
        cov = (z - mean_b) * lax.rsqrt(var_b + 1e-5) * fpg_ref[...] + fpb_ref[...]

        # enc1: concat([cov_flat, yprv]) as split-row matmul, merged lin1|lin3
        y1 = (jnp.dot(cov.astype(mm_dtype), e1wa_ref[...],
                      preferred_element_type=f32)
              + jnp.dot(yprv_ref[...], e1wb_ref[...], preferred_element_type=f32)
              + e1b13_ref[...])
        h1 = (jnp.dot(jnp.maximum(y1[:, :hp], 0.0).astype(mm_dtype),
                      e1w2_ref[...], preferred_element_type=f32)
              + e1b2_ref[...] + y1[:, hp:])
        o_ref[...] = _layernorm_pad(h1, e1g_ref[...], e1bb_ref[...],
                                    hdim).astype(o_ref.dtype)

    if n_enc2 > 0:
        # one enc2 layer per grid step; this layer's weights were streamed in
        # by the layer-indexed BlockSpecs.  The carry lives in o_ref (VMEM
        # resident across the layer axis; written to HBM once per batch tile).
        hcur = o_ref[...]
        yl = (jnp.dot(hcur.astype(mm_dtype), e2w13_ref[0],
                      preferred_element_type=f32)
              + e2b13_ref[0])
        hl = (jnp.dot(jnp.maximum(yl[:, :hp], 0.0).astype(mm_dtype),
                      e2w2_ref[0], preferred_element_type=f32)
              + e2b2_ref[0] + yl[:, hp:])
        o_ref[...] = _layernorm_pad(hl, e2g_ref[0], e2bb_ref[0],
                                    hdim).astype(o_ref.dtype)


# ----------------------------------------------------------------------------
# Deterministic parameter init (PyTorch-style uniform(-1/sqrt(fan_in), ...))
# ----------------------------------------------------------------------------
def init_linear(key, in_dim, out_dim):
    kw, kb = jax.random.split(key)
    bound = 1.0 / (in_dim ** 0.5)
    w = jax.random.uniform(kw, (in_dim, out_dim), jnp.float32, -bound, bound)
    b = jax.random.uniform(kb, (1, out_dim), jnp.float32, -bound, bound)
    return w, b


def init_res(key, idim, hdim, odim):
    k1, k2, k3 = jax.random.split(key, 3)
    w1, b1 = init_linear(k1, idim, hdim)
    w2, b2 = init_linear(k2, hdim, odim)
    w3, b3 = init_linear(k3, idim, odim)
    gamma = jnp.ones((1, odim), jnp.float32)
    beta = jnp.zeros((1, odim), jnp.float32)
    return (w1, b1, w2, b2, w3, b3, gamma, beta)


# ----------------------------------------------------------------------------
# Enc wrapper: builds the fused, lane-padded weight layout once; one
# pallas_call per forward.
# ----------------------------------------------------------------------------
class Enc:
    def __init__(self, key, idim, covariatedim, hdim, drop, nlay, nprd, nseq,
                 matmul_dtype=jnp.bfloat16):
        del drop  # inference: dropout is identity
        self.idim, self.cdim, self.hdim = idim, covariatedim, hdim
        self.nseq, self.nprd = nseq, nprd
        self.T = T = nseq + nprd
        self.nlay = nlay
        self.mm_dtype = matmul_dtype
        cdim = covariatedim
        f32 = jnp.float32
        mmd = matmul_dtype

        keys = jax.random.split(key, nlay + 1)
        fp = init_res(keys[0], idim, cdim, cdim)
        e1 = init_res(keys[1], T * cdim + nseq, hdim, hdim)
        e2 = [init_res(keys[2 + i], hdim, hdim, hdim) for i in range(nlay - 1)]
        self._raw = (fp, e1, e2)   # for the pure-JAX reference check

        # Lane-padded widths: all split points (cp_pad / hp) are 128-aligned.
        self.xin = xin = T * idim
        self.cp = cp = T * cdim
        self.xin_pad = xin_pad = _ru(xin, 128)
        self.cp_pad = cp_pad = _ru(cp, 128)
        self.hp = hp = _ru(hdim, 128)
        self.ns_pad = ns_pad = _ru(nseq, 128)

        # --- featproj: block-diagonal over the T timesteps, merged lin1|lin3
        w1, b1, w2, b2, w3, b3, g, bt = fp
        eyeT = jnp.eye(T, dtype=f32)
        fp_w13 = (jnp.zeros((xin_pad, 2 * cp_pad), mmd)
                  .at[:xin, :cp].set(jnp.kron(eyeT, w1).astype(mmd))
                  .at[:xin, cp_pad:cp_pad + cp].set(jnp.kron(eyeT, w3).astype(mmd)))
        fp_b13 = (jnp.zeros((1, 2 * cp_pad), f32)
                  .at[:, :cp].set(jnp.tile(b1, (1, T)))
                  .at[:, cp_pad:cp_pad + cp].set(jnp.tile(b3, (1, T))))
        fp_w2 = (jnp.zeros((cp_pad, cp_pad), mmd)
                 .at[:cp, :cp].set(jnp.kron(eyeT, w2).astype(mmd)))
        fp_b2 = jnp.zeros((1, cp_pad), f32).at[:, :cp].set(jnp.tile(b2, (1, T)))
        # per-timestep averaging matrix (kept f32 for exact LN moments)
        fp_A = jnp.zeros((cp_pad, cp_pad), f32).at[:cp, :cp].set(
            jnp.kron(eyeT, jnp.full((cdim, cdim), 1.0 / cdim, f32)))
        fp_g = jnp.zeros((1, cp_pad), f32).at[:, :cp].set(jnp.tile(g, (1, T)))
        fp_bt = jnp.zeros((1, cp_pad), f32).at[:, :cp].set(jnp.tile(bt, (1, T)))

        # --- enc1: merged lin1|lin3, input rows split at the concat boundary
        w1, b1, w2, b2, w3, b3, g, bt = e1
        e1_wa = (jnp.zeros((cp_pad, 2 * hp), mmd)
                 .at[:cp, :hdim].set(w1[:cp].astype(mmd))
                 .at[:cp, hp:hp + hdim].set(w3[:cp].astype(mmd)))
        e1_wb = (jnp.zeros((ns_pad, 2 * hp), mmd)
                 .at[:nseq, :hdim].set(w1[cp:].astype(mmd))
                 .at[:nseq, hp:hp + hdim].set(w3[cp:].astype(mmd)))
        e1_b13 = (jnp.zeros((1, 2 * hp), f32)
                  .at[:, :hdim].set(b1).at[:, hp:hp + hdim].set(b3))
        e1_w2 = jnp.zeros((hp, hp), mmd).at[:hdim, :hdim].set(w2.astype(mmd))
        e1_b2 = jnp.zeros((1, hp), f32).at[:, :hdim].set(b2)
        e1_g = jnp.zeros((1, hp), f32).at[:, :hdim].set(g)
        e1_bt = jnp.zeros((1, hp), f32).at[:, :hdim].set(bt)

        self.const_params = (fp_w13, fp_b13, fp_w2, fp_b2, fp_A, fp_g, fp_bt,
                             e1_wa, e1_wb, e1_b13, e1_w2, e1_b2, e1_g, e1_bt)

        # --- enc2: stacked per-layer weights, streamed one layer per grid step
        L = nlay - 1
        self.n_enc2 = L

        def pad_w13(wa, wc):
            return (jnp.zeros((hp, 2 * hp), mmd)
                    .at[:hdim, :hdim].set(wa.astype(mmd))
                    .at[:hdim, hp:hp + hdim].set(wc.astype(mmd)))

        if L > 0:
            e2_w13 = jnp.stack([pad_w13(p[0], p[4]) for p in e2])
            e2_b13 = jnp.stack([jnp.zeros((1, 2 * hp), f32)
                                .at[:, :hdim].set(p[1])
                                .at[:, hp:hp + hdim].set(p[5]) for p in e2])
            e2_w2 = jnp.stack([jnp.zeros((hp, hp), mmd)
                               .at[:hdim, :hdim].set(p[2].astype(mmd)) for p in e2])
            e2_b2 = jnp.stack([jnp.zeros((1, hp), f32).at[:, :hdim].set(p[3])
                               for p in e2])
            e2_g = jnp.stack([jnp.zeros((1, hp), f32).at[:, :hdim].set(p[6])
                              for p in e2])
            e2_bt = jnp.stack([jnp.zeros((1, hp), f32).at[:, :hdim].set(p[7])
                               for p in e2])
        else:  # valid operand shapes; enc2 body statically skipped
            e2_w13 = jnp.zeros((1, hp, 2 * hp), mmd)
            e2_b13 = jnp.zeros((1, 1, 2 * hp), f32)
            e2_w2 = jnp.zeros((1, hp, hp), mmd)
            e2_b2 = jnp.zeros((1, 1, hp), f32)
            e2_g = jnp.zeros((1, 1, hp), f32)
            e2_bt = jnp.zeros((1, 1, hp), f32)
        self.layer_params = (e2_w13, e2_b13, e2_w2, e2_b2, e2_g, e2_bt)

    def __call__(self, x, yprv):
        B, T, idim = x.shape
        assert T == self.T and idim == self.idim
        f32 = jnp.float32
        mmd = self.mm_dtype
        hp, cp_pad = self.hp, self.cp_pad

        # Batch tiling: pad to whole multiple-of-16 row tiles.  For B >= 32
        # use >= 2 grid steps so the "parallel" batch axis can shard across
        # both v7x TensorCores; cap the tile at 1024 rows (v5e/v6e sweep).
        Bp = _ru(max(B, 1), 16)
        if Bp >= 32:
            tb = min(1024, _ru(-(-Bp // 2), 16))
        else:
            tb = Bp
        Bp = _ru(Bp, tb)
        nb = Bp // tb
        n_lay_steps = max(self.n_enc2, 1)

        x2 = x.reshape(B, T * idim).astype(mmd)
        xp = jnp.zeros((Bp, self.xin_pad), mmd).at[:B, :self.xin].set(x2)
        yp = jnp.zeros((Bp, self.ns_pad), mmd).at[:B, :self.nseq].set(
            yprv.astype(mmd))

        kernel = functools.partial(
            _enc_kernel, cp_pad=cp_pad, hp=hp, hdim=self.hdim,
            n_enc2=self.n_enc2, mm_dtype=mmd)

        row_map = lambda i, l: (i, 0)
        const2 = lambda i, l: (0, 0)
        lay3 = lambda i, l: (l, 0, 0)

        in_specs = ([pl.BlockSpec((tb, self.xin_pad), row_map),
                     pl.BlockSpec((tb, self.ns_pad), row_map)]
                    + [pl.BlockSpec(p.shape, const2) for p in self.const_params]
                    + [pl.BlockSpec((1,) + p.shape[1:], lay3)
                       for p in self.layer_params])

        # advisory scheduling hint for surrounding XLA ops
        mm_flops = 2 * Bp * (
            self.xin_pad * 2 * cp_pad + cp_pad * cp_pad + 2 * cp_pad * cp_pad
            + cp_pad * 2 * hp + self.ns_pad * 2 * hp + hp * hp
            + self.n_enc2 * (hp * 2 * hp + hp * hp))
        param_bytes = sum(int(p.size) * p.dtype.itemsize
                          for p in self.const_params + self.layer_params)
        cost = pl.CostEstimate(
            flops=int(mm_flops),
            transcendentals=int(Bp * (cp_pad + hp * (1 + self.n_enc2))),
            bytes_accessed=int(int(xp.size) * xp.dtype.itemsize
                               + int(yp.size) * yp.dtype.itemsize
                               + nb * param_bytes + Bp * hp * 4))

        out = pl.pallas_call(
            kernel,
            out_shape=jax.ShapeDtypeStruct((Bp, hp), f32),
            grid=(nb, n_lay_steps),
            in_specs=in_specs,
            out_specs=pl.BlockSpec((tb, hp), row_map),
            compiler_params=pltpu.CompilerParams(
                dimension_semantics=("parallel", "arbitrary"),
                vmem_limit_bytes=_vmem_limit_bytes()),
            cost_estimate=cost,
        )(xp, yp, *self.const_params, *self.layer_params)
        return out[:B, :self.hdim]


# ----------------------------------------------------------------------------
# Pure-JAX reference (mirrors the PyTorch module) for a correctness check
# ----------------------------------------------------------------------------
def _res_ref(x, p):
    w1, b1, w2, b2, w3, b3, g, bt = p
    hi = jax.lax.Precision.HIGHEST
    h = jnp.dot(jnp.maximum(jnp.dot(x, w1, precision=hi) + b1, 0.0), w2,
                precision=hi) + b2
    r = jnp.dot(x, w3, precision=hi) + b3
    y = h + r
    m = jnp.mean(y, axis=-1, keepdims=True)
    c = y - m
    v = jnp.mean(c * c, axis=-1, keepdims=True)
    return c * lax.rsqrt(v + 1e-5) * g + bt


def _enc_ref(enc, x, yprv):
    fp, e1, e2 = enc._raw
    B, T, idim = x.shape
    cov = _res_ref(x.reshape(B * T, idim).astype(jnp.float32),
                   fp).reshape(B, T * enc.cdim)
    h = jnp.concatenate([cov, yprv.astype(jnp.float32)], axis=1)
    h = _res_ref(h, e1)
    for p in e2:
        h = _res_ref(h, p)
    return h


if __name__ == "__main__":
    # Small, forward-consistent shapes
    B, nseq, nprd = 2, 8, 4
    idim, covariatedim, hdim = 8, 4, 32
    nlay, drop = 3, 0.1

    key = jax.random.PRNGKey(0)
    kx, ky, kp = jax.random.split(key, 3)

    x = jax.random.normal(kx, (B, nseq + nprd, idim), jnp.float32)
    yprv = jax.random.normal(ky, (B, nseq), jnp.float32)

    enc = Enc(kp, idim, covariatedim, hdim, drop, nlay, nprd, nseq)
    out = jax.block_until_ready(enc(x, yprv))
    assert out.shape == (B, hdim), out.shape

    ref = jax.block_until_ready(_enc_ref(enc, x, yprv))
    diff = jnp.abs(out - ref)
    err_mean = float(jnp.mean(diff))
    err_max = float(jnp.max(diff))
    # Kernel uses bf16 matmuls (f32 accumulation); reference is f32 HIGHEST.
    # Tolerances sized for bf16 rounding but far below any structural-bug error.
    assert err_mean < 5e-2 and err_max < 3e-1, (err_mean, err_max)
    print("KERNEL_OK")
</pallas_src>

<mosaic_0001>
module attributes {stable_mosaic.version = 11 : i64} {
  func.func @_enc_kernel(%arg0: i32, %arg1: i32, %arg2: memref<16x128xbf16, #tpu.memory_space<vmem>>, %arg3: memref<16x128xbf16, #tpu.memory_space<vmem>>, %arg4: memref<128x256xbf16, #tpu.memory_space<vmem>>, %arg5: memref<1x256xf32, #tpu.memory_space<vmem>>, %arg6: memref<128x128xbf16, #tpu.memory_space<vmem>>, %arg7: memref<1x128xf32, #tpu.memory_space<vmem>>, %arg8: memref<128x128xf32, #tpu.memory_space<vmem>>, %arg9: memref<1x128xf32, #tpu.memory_space<vmem>>, %arg10: memref<1x128xf32, #tpu.memory_space<vmem>>, %arg11: memref<128x256xbf16, #tpu.memory_space<vmem>>, %arg12: memref<128x256xbf16, #tpu.memory_space<vmem>>, %arg13: memref<1x256xf32, #tpu.memory_space<vmem>>, %arg14: memref<128x128xbf16, #tpu.memory_space<vmem>>, %arg15: memref<1x128xf32, #tpu.memory_space<vmem>>, %arg16: memref<1x128xf32, #tpu.memory_space<vmem>>, %arg17: memref<1x128xf32, #tpu.memory_space<vmem>>, %arg18: memref<1x128x256xbf16, #tpu.memory_space<vmem>>, %arg19: memref<1x1x256xf32, #tpu.memory_space<vmem>>, %arg20: memref<1x128x128xbf16, #tpu.memory_space<vmem>>, %arg21: memref<1x1x128xf32, #tpu.memory_space<vmem>>, %arg22: memref<1x1x128xf32, #tpu.memory_space<vmem>>, %arg23: memref<1x1x128xf32, #tpu.memory_space<vmem>>, %arg24: memref<16x128xf32, #tpu.memory_space<vmem>>) attributes {dimension_semantics = [#tpu.dimension_semantics<parallel>, #tpu.dimension_semantics<arbitrary>], iteration_bounds = array<i64: 1, 2>, scalar_prefetch = 0 : i64, scratch_operands = 0 : i64, tpu.core_type = #tpu.core_type<tc>, window_params = [{transform_indices = @transform_0, window_bounds = array<i64: 16, 128>}, {transform_indices = @transform_1, window_bounds = array<i64: 16, 128>}, {pipeline_mode = #tpu.pipeline_mode<synchronous>, transform_indices = @transform_2, window_bounds = array<i64: 128, 256>}, {pipeline_mode = #tpu.pipeline_mode<synchronous>, transform_indices = @transform_3, window_bounds = array<i64: 1, 256>}, {pipeline_mode = #tpu.pipeline_mode<synchronous>, transform_indices = @transform_4, window_bounds = array<i64: 128, 128>}, {pipeline_mode = #tpu.pipeline_mode<synchronous>, transform_indices = @transform_5, window_bounds = array<i64: 1, 128>}, {pipeline_mode = #tpu.pipeline_mode<synchronous>, transform_indices = @transform_6, window_bounds = array<i64: 128, 128>}, {pipeline_mode = #tpu.pipeline_mode<synchronous>, transform_indices = @transform_7, window_bounds = array<i64: 1, 128>}, {pipeline_mode = #tpu.pipeline_mode<synchronous>, transform_indices = @transform_8, window_bounds = array<i64: 1, 128>}, {pipeline_mode = #tpu.pipeline_mode<synchronous>, transform_indices = @transform_9, window_bounds = array<i64: 128, 256>}, {pipeline_mode = #tpu.pipeline_mode<synchronous>, transform_indices = @transform_10, window_bounds = array<i64: 128, 256>}, {pipeline_mode = #tpu.pipeline_mode<synchronous>, transform_indices = @transform_11, window_bounds = array<i64: 1, 256>}, {pipeline_mode = #tpu.pipeline_mode<synchronous>, transform_indices = @transform_12, window_bounds = array<i64: 128, 128>}, {pipeline_mode = #tpu.pipeline_mode<synchronous>, transform_indices = @transform_13, window_bounds = array<i64: 1, 128>}, {pipeline_mode = #tpu.pipeline_mode<synchronous>, transform_indices = @transform_14, window_bounds = array<i64: 1, 128>}, {pipeline_mode = #tpu.pipeline_mode<synchronous>, transform_indices = @transform_15, window_bounds = array<i64: 1, 128>}, {transform_indices = @transform_16, window_bounds = array<i64: 1, 128, 256>}, {transform_indices = @transform_17, window_bounds = array<i64: 1, 1, 256>}, {transform_indices = @transform_18, window_bounds = array<i64: 1, 128, 128>}, {transform_indices = @transform_19, window_bounds = array<i64: 1, 1, 128>}, {transform_indices = @transform_20, window_bounds = array<i64: 1, 1, 128>}, {transform_indices = @transform_21, window_bounds = array<i64: 1, 1, 128>}, {transform_indices = @transform_22, window_bounds = array<i64: 16, 128>}]} {
    %c0_i32 = arith.constant 0 : i32
    %0 = arith.cmpi eq, %arg1, %c0_i32 : i32
    %1 = arith.extui %0 : i1 to i32
    %c0_i32_0 = arith.constant 0 : i32
    %2 = arith.cmpi ne, %1, %c0_i32_0 : i32
    scf.if %2 {
      %c0_29 = arith.constant 0 : index
      %c0_30 = arith.constant 0 : index
      %52 = vector.load %arg2[%c0_29, %c0_30] : memref<16x128xbf16, #tpu.memory_space<vmem>>, vector<16x128xbf16>
      %c0_31 = arith.constant 0 : index
      %c0_32 = arith.constant 0 : index
      %53 = vector.load %arg4[%c0_31, %c0_32] : memref<128x256xbf16, #tpu.memory_space<vmem>>, vector<128x256xbf16>
      %cst_33 = arith.constant dense<0.000000e+00> : vector<16x256xf32>
      %54 = tpu.matmul %52, %53, %cst_33 {dimension_numbers = #tpu.dot_dimension_numbers<[1], [0], [0], [1], [0, 0, 1, 1], [], []>} : vector<16x128xbf16>, vector<128x256xbf16>, vector<16x256xf32> -> vector<16x256xf32>
      %c0_34 = arith.constant 0 : index
      %c0_35 = arith.constant 0 : index
      %55 = vector.load %arg5[%c0_34, %c0_35] : memref<1x256xf32, #tpu.memory_space<vmem>>, vector<1x256xf32>
      %56 = vector.broadcast %55 : vector<1x256xf32> to vector<16x256xf32>
      %57 = arith.addf %54, %56 : vector<16x256xf32>
      %58 = vector.extract_strided_slice %57 {offsets = [0, 0], sizes = [16, 128], strides = [1, 1]} : vector<16x256xf32> to vector<16x128xf32>
      %cst_36 = arith.constant 0.000000e+00 : f32
      %59 = vector.broadcast %cst_36 : f32 to vector<16x128xf32>
      %60 = arith.maximumf %58, %59 : vector<16x128xf32>
      %61 = arith.truncf %60 : vector<16x128xf32> to vector<16x128xbf16>
      %c0_37 = arith.constant 0 : index
      %c0_38 = arith.constant 0 : index
      %62 = vector.load %arg6[%c0_37, %c0_38] : memref<128x128xbf16, #tpu.memory_space<vmem>>, vector<128x128xbf16>
      %cst_39 = arith.constant dense<0.000000e+00> : vector<16x128xf32>
      %63 = tpu.matmul %61, %62, %cst_39 {dimension_numbers = #tpu.dot_dimension_numbers<[1], [0], [0], [1], [0, 0, 1, 1], [], []>} : vector<16x128xbf16>, vector<128x128xbf16>, vector<16x128xf32> -> vector<16x128xf32>
      %c0_40 = arith.constant 0 : index
      %c0_41 = arith.constant 0 : index
      %64 = vector.load %arg7[%c0_40, %c0_41] : memref<1x128xf32, #tpu.memory_space<vmem>>, vector<1x128xf32>
      %65 = vector.broadcast %64 : vector<1x128xf32> to vector<16x128xf32>
      %66 = arith.addf %63, %65 : vector<16x128xf32>
      %67 = vector.extract_strided_slice %57 {offsets = [0, 128], sizes = [16, 128], strides = [1, 1]} : vector<16x256xf32> to vector<16x128xf32>
      %68 = arith.addf %66, %67 : vector<16x128xf32>
      %c0_42 = arith.constant 0 : index
      %c0_43 = arith.constant 0 : index
      %69 = vector.load %arg8[%c0_42, %c0_43] : memref<128x128xf32, #tpu.memory_space<vmem>>, vector<128x128xf32>
      %cst_44 = arith.constant dense<0.000000e+00> : vector<16x128xf32>
      %70 = tpu.matmul %68, %69, %cst_44 {dimension_numbers = #tpu.dot_dimension_numbers<[1], [0], [0], [1], [0, 0, 1, 1], [], []>} : vector<16x128xf32>, vector<128x128xf32>, vector<16x128xf32> -> vector<16x128xf32>
      %71 = arith.mulf %68, %68 : vector<16x128xf32>
      %cst_45 = arith.constant dense<0.000000e+00> : vector<16x128xf32>
      %72 = tpu.matmul %71, %69, %cst_45 {dimension_numbers = #tpu.dot_dimension_numbers<[1], [0], [0], [1], [0, 0, 1, 1], [], []>} : vector<16x128xf32>, vector<128x128xf32>, vector<16x128xf32> -> vector<16x128xf32>
      %73 = arith.mulf %70, %70 : vector<16x128xf32>
      %74 = arith.subf %72, %73 : vector<16x128xf32>
      %75 = arith.subf %68, %70 : vector<16x128xf32>
      %cst_46 = arith.constant 9.99999974E-6 : f32
      %76 = vector.broadcast %cst_46 : f32 to vector<16x128xf32>
      %77 = arith.addf %74, %76 : vector<16x128xf32>
      %78 = math.rsqrt %77 : vector<16x128xf32>
      %79 = arith.mulf %75, %78 : vector<16x128xf32>
      %c0_47 = arith.constant 0 : index
      %c0_48 = arith.constant 0 : index
      %80 = vector.load %arg9[%c0_47, %c0_48] : memref<1x128xf32, #tpu.memory_space<vmem>>, vector<1x128xf32>
      %81 = vector.broadcast %80 : vector<1x128xf32> to vector<16x128xf32>
      %82 = arith.mulf %79, %81 : vector<16x128xf32>
      %c0_49 = arith.constant 0 : index
      %c0_50 = arith.constant 0 : index
      %83 = vector.load %arg10[%c0_49, %c0_50] : memref<1x128xf32, #tpu.memory_space<vmem>>, vector<1x128xf32>
      %84 = vector.broadcast %83 : vector<1x128xf32> to vector<16x128xf32>
      %85 = arith.addf %82, %84 : vector<16x128xf32>
      %86 = arith.truncf %85 : vector<16x128xf32> to vector<16x128xbf16>
      %c0_51 = arith.constant 0 : index
      %c0_52 = arith.constant 0 : index
      %87 = vector.load %arg11[%c0_51, %c0_52] : memref<128x256xbf16, #tpu.memory_space<vmem>>, vector<128x256xbf16>
      %cst_53 = arith.constant dense<0.000000e+00> : vector<16x256xf32>
      %88 = tpu.matmul %86, %87, %cst_53 {dimension_numbers = #tpu.dot_dimension_numbers<[1], [0], [0], [1], [0, 0, 1, 1], [], []>} : vector<16x128xbf16>, vector<128x256xbf16>, vector<16x256xf32> -> vector<16x256xf32>
      %c0_54 = arith.constant 0 : index
      %c0_55 = arith.constant 0 : index
      %89 = vector.load %arg3[%c0_54, %c0_55] : memref<16x128xbf16, #tpu.memory_space<vmem>>, vector<16x128xbf16>
      %c0_56 = arith.constant 0 : index
      %c0_57 = arith.constant 0 : index
      %90 = vector.load %arg12[%c0_56, %c0_57] : memref<128x256xbf16, #tpu.memory_space<vmem>>, vector<128x256xbf16>
      %cst_58 = arith.constant dense<0.000000e+00> : vector<16x256xf32>
      %91 = tpu.matmul %89, %90, %cst_58 {dimension_numbers = #tpu.dot_dimension_numbers<[1], [0], [0], [1], [0, 0, 1, 1], [], []>} : vector<16x128xbf16>, vector<128x256xbf16>, vector<16x256xf32> -> vector<16x256xf32>
      %92 = arith.addf %88, %91 : vector<16x256xf32>
      %c0_59 = arith.constant 0 : index
      %c0_60 = arith.constant 0 : index
      %93 = vector.load %arg13[%c0_59, %c0_60] : memref<1x256xf32, #tpu.memory_space<vmem>>, vector<1x256xf32>
      %94 = vector.broadcast %93 : vector<1x256xf32> to vector<16x256xf32>
      %95 = arith.addf %92, %94 : vector<16x256xf32>
      %96 = vector.extract_strided_slice %95 {offsets = [0, 0], sizes = [16, 128], strides = [1, 1]} : vector<16x256xf32> to vector<16x128xf32>
      %cst_61 = arith.constant 0.000000e+00 : f32
      %97 = vector.broadcast %cst_61 : f32 to vector<16x128xf32>
      %98 = arith.maximumf %96, %97 : vector<16x128xf32>
      %99 = arith.truncf %98 : vector<16x128xf32> to vector<16x128xbf16>
      %c0_62 = arith.constant 0 : index
      %c0_63 = arith.constant 0 : index
      %100 = vector.load %arg14[%c0_62, %c0_63] : memref<128x128xbf16, #tpu.memory_space<vmem>>, vector<128x128xbf16>
      %cst_64 = arith.constant dense<0.000000e+00> : vector<16x128xf32>
      %101 = tpu.matmul %99, %100, %cst_64 {dimension_numbers = #tpu.dot_dimension_numbers<[1], [0], [0], [1], [0, 0, 1, 1], [], []>} : vector<16x128xbf16>, vector<128x128xbf16>, vector<16x128xf32> -> vector<16x128xf32>
      %c0_65 = arith.constant 0 : index
      %c0_66 = arith.constant 0 : index
      %102 = vector.load %arg15[%c0_65, %c0_66] : memref<1x128xf32, #tpu.memory_space<vmem>>, vector<1x128xf32>
      %103 = vector.broadcast %102 : vector<1x128xf32> to vector<16x128xf32>
      %104 = arith.addf %101, %103 : vector<16x128xf32>
      %105 = vector.extract_strided_slice %95 {offsets = [0, 128], sizes = [16, 128], strides = [1, 1]} : vector<16x256xf32> to vector<16x128xf32>
      %106 = arith.addf %104, %105 : vector<16x128xf32>
      %c0_67 = arith.constant 0 : index
      %c0_68 = arith.constant 0 : index
      %107 = vector.load %arg16[%c0_67, %c0_68] : memref<1x128xf32, #tpu.memory_space<vmem>>, vector<1x128xf32>
      %c0_69 = arith.constant 0 : index
      %c0_70 = arith.constant 0 : index
      %108 = vector.load %arg17[%c0_69, %c0_70] : memref<1x128xf32, #tpu.memory_space<vmem>>, vector<1x128xf32>
      %cst_71 = arith.constant dense<0.000000e+00> : vector<16xf32>
      %109 = vector.multi_reduction <add>, %106, %cst_71 [1] : vector<16x128xf32> to vector<16xf32>
      %110 = vector.shape_cast %109 : vector<16xf32> to vector<16x1xf32>
      %cst_72 = arith.constant 3.125000e-02 : f32
      %111 = vector.broadcast %cst_72 : f32 to vector<16x1xf32>
      %112 = arith.mulf %110, %111 : vector<16x1xf32>
      %113 = arith.mulf %106, %106 : vector<16x128xf32>
      %cst_73 = arith.constant dense<0.000000e+00> : vector<16xf32>
      %114 = vector.multi_reduction <add>, %113, %cst_73 [1] : vector<16x128xf32> to vector<16xf32>
      %115 = vector.shape_cast %114 : vector<16xf32> to vector<16x1xf32>
      %cst_74 = arith.constant 3.125000e-02 : f32
      %116 = vector.broadcast %cst_74 : f32 to vector<16x1xf32>
      %117 = arith.mulf %115, %116 : vector<16x1xf32>
      %118 = arith.mulf %112, %112 : vector<16x1xf32>
      %119 = arith.subf %117, %118 : vector<16x1xf32>
      %120 = vector.broadcast %112 : vector<16x1xf32> to vector<16x128xf32>
      %121 = arith.subf %106, %120 : vector<16x128xf32>
      %cst_75 = arith.constant 9.99999974E-6 : f32
      %122 = vector.broadcast %cst_75 : f32 to vector<16x1xf32>
      %123 = arith.addf %119, %122 : vector<16x1xf32>
      %124 = math.rsqrt %123 : vector<16x1xf32>
      %125 = vector.broadcast %124 : vector<16x1xf32> to vector<16x128xf32>
      %126 = arith.mulf %121, %125 : vector<16x128xf32>
      %127 = vector.broadcast %107 : vector<1x128xf32> to vector<16x128xf32>
      %128 = arith.mulf %126, %127 : vector<16x128xf32>
      %129 = vector.broadcast %108 : vector<1x128xf32> to vector<16x128xf32>
      %130 = arith.addf %128, %129 : vector<16x128xf32>
      %c0_76 = arith.constant 0 : index
      %c0_77 = arith.constant 0 : index
      %131 = vector.load %arg24[%c0_76, %c0_77] : memref<16x128xf32, #tpu.memory_space<vmem>>, vector<16x128xf32>
      tpu.vector_store %arg24[%c0_76, %c0_77], %130 {strides = array<i32>} : memref<16x128xf32, #tpu.memory_space<vmem>>, vector<16x128xf32>,
    } else {
    }
    %c0 = arith.constant 0 : index
    %c0_1 = arith.constant 0 : index
    %3 = vector.load %arg24[%c0, %c0_1] : memref<16x128xf32, #tpu.memory_space<vmem>>, vector<16x128xf32>
    %4 = arith.truncf %3 : vector<16x128xf32> to vector<16x128xbf16>
    %c0_2 = arith.constant 0 : index
    %c0_3 = arith.constant 0 : index
    %c0_4 = arith.constant 0 : index
    %5 = vector.load %arg18[%c0_2, %c0_3, %c0_4] : memref<1x128x256xbf16, #tpu.memory_space<vmem>>, vector<1x128x256xbf16>
    %6 = vector.shape_cast %5 : vector<1x128x256xbf16> to vector<128x256xbf16>
    %cst = arith.constant dense<0.000000e+00> : vector<16x256xf32>
    %7 = tpu.matmul %4, %6, %cst {dimension_numbers = #tpu.dot_dimension_numbers<[1], [0], [0], [1], [0, 0, 1, 1], [], []>} : vector<16x128xbf16>, vector<128x256xbf16>, vector<16x256xf32> -> vector<16x256xf32>
    %c0_5 = arith.constant 0 : index
    %c0_6 = arith.constant 0 : index
    %c0_7 = arith.constant 0 : index
    %8 = vector.load %arg19[%c0_5, %c0_6, %c0_7] : memref<1x1x256xf32, #tpu.memory_space<vmem>>, vector<1x1x256xf32>
    %9 = vector.shape_cast %8 : vector<1x1x256xf32> to vector<1x256xf32>
    %10 = vector.broadcast %9 : vector<1x256xf32> to vector<16x256xf32>
    %11 = arith.addf %7, %10 : vector<16x256xf32>
    %12 = vector.extract_strided_slice %11 {offsets = [0, 0], sizes = [16, 128], strides = [1, 1]} : vector<16x256xf32> to vector<16x128xf32>
    %cst_8 = arith.constant 0.000000e+00 : f32
    %13 = vector.broadcast %cst_8 : f32 to vector<16x128xf32>
    %14 = arith.maximumf %12, %13 : vector<16x128xf32>
    %15 = arith.truncf %14 : vector<16x128xf32> to vector<16x128xbf16>
    %c0_9 = arith.constant 0 : index
    %c0_10 = arith.constant 0 : index
    %c0_11 = arith.constant 0 : index
    %16 = vector.load %arg20[%c0_9, %c0_10, %c0_11] : memref<1x128x128xbf16, #tpu.memory_space<vmem>>, vector<1x128x128xbf16>
    %17 = vector.shape_cast %16 : vector<1x128x128xbf16> to vector<128x128xbf16>
    %cst_12 = arith.constant dense<0.000000e+00> : vector<16x128xf32>
    %18 = tpu.matmul %15, %17, %cst_12 {dimension_numbers = #tpu.dot_dimension_numbers<[1], [0], [0], [1], [0, 0, 1, 1], [], []>} : vector<16x128xbf16>, vector<128x128xbf16>, vector<16x128xf32> -> vector<16x128xf32>
    %c0_13 = arith.constant 0 : index
    %c0_14 = arith.constant 0 : index
    %c0_15 = arith.constant 0 : index
    %19 = vector.load %arg21[%c0_13, %c0_14, %c0_15] : memref<1x1x128xf32, #tpu.memory_space<vmem>>, vector<1x1x128xf32>
    %20 = vector.shape_cast %19 : vector<1x1x128xf32> to vector<1x128xf32>
    %21 = vector.broadcast %20 : vector<1x128xf32> to vector<16x128xf32>
    %22 = arith.addf %18, %21 : vector<16x128xf32>
    %23 = vector.extract_strided_slice %11 {offsets = [0, 128], sizes = [16, 128], strides = [1, 1]} : vector<16x256xf32> to vector<16x128xf32>
    %24 = arith.addf %22, %23 : vector<16x128xf32>
    %c0_16 = arith.constant 0 : index
    %c0_17 = arith.constant 0 : index
    %c0_18 = arith.constant 0 : index
    %25 = vector.load %arg22[%c0_16, %c0_17, %c0_18] : memref<1x1x128xf32, #tpu.memory_space<vmem>>, vector<1x1x128xf32>
    %26 = vector.shape_cast %25 : vector<1x1x128xf32> to vector<1x128xf32>
    %c0_19 = arith.constant 0 : index
    %c0_20 = arith.constant 0 : index
    %c0_21 = arith.constant 0 : index
    %27 = vector.load %arg23[%c0_19, %c0_20, %c0_21] : memref<1x1x128xf32, #tpu.memory_space<vmem>>, vector<1x1x128xf32>
    %28 = vector.shape_cast %27 : vector<1x1x128xf32> to vector<1x128xf32>
    %cst_22 = arith.constant dense<0.000000e+00> : vector<16xf32>
    %29 = vector.multi_reduction <add>, %24, %cst_22 [1] : vector<16x128xf32> to vector<16xf32>
    %30 = vector.shape_cast %29 : vector<16xf32> to vector<16x1xf32>
    %cst_23 = arith.constant 3.125000e-02 : f32
    %31 = vector.broadcast %cst_23 : f32 to vector<16x1xf32>
    %32 = arith.mulf %30, %31 : vector<16x1xf32>
    %33 = arith.mulf %24, %24 : vector<16x128xf32>
    %cst_24 = arith.constant dense<0.000000e+00> : vector<16xf32>
    %34 = vector.multi_reduction <add>, %33, %cst_24 [1] : vector<16x128xf32> to vector<16xf32>
    %35 = vector.shape_cast %34 : vector<16xf32> to vector<16x1xf32>
    %cst_25 = arith.constant 3.125000e-02 : f32
    %36 = vector.broadcast %cst_25 : f32 to vector<16x1xf32>
    %37 = arith.mulf %35, %36 : vector<16x1xf32>
    %38 = arith.mulf %32, %32 : vector<16x1xf32>
    %39 = arith.subf %37, %38 : vector<16x1xf32>
    %40 = vector.broadcast %32 : vector<16x1xf32> to vector<16x128xf32>
    %41 = arith.subf %24, %40 : vector<16x128xf32>
    %cst_26 = arith.constant 9.99999974E-6 : f32
    %42 = vector.broadcast %cst_26 : f32 to vector<16x1xf32>
    %43 = arith.addf %39, %42 : vector<16x1xf32>
    %44 = math.rsqrt %43 : vector<16x1xf32>
    %45 = vector.broadcast %44 : vector<16x1xf32> to vector<16x128xf32>
    %46 = arith.mulf %41, %45 : vector<16x128xf32>
    %47 = vector.broadcast %26 : vector<1x128xf32> to vector<16x128xf32>
    %48 = arith.mulf %46, %47 : vector<16x128xf32>
    %49 = vector.broadcast %28 : vector<1x128xf32> to vector<16x128xf32>
    %50 = arith.addf %48, %49 : vector<16x128xf32>
    %c0_27 = arith.constant 0 : index
    %c0_28 = arith.constant 0 : index
    %51 = vector.load %arg24[%c0_27, %c0_28] : memref<16x128xf32, #tpu.memory_space<vmem>>, vector<16x128xf32>
    tpu.vector_store %arg24[%c0_27, %c0_28], %50 {strides = array<i32>} : memref<16x128xf32, #tpu.memory_space<vmem>>, vector<16x128xf32>,
    return
  }
  func.func @transform_0(%arg0: i32, %arg1: i32) -> (i32, i32) {
    %c0_i32 = arith.constant 0 : i32
    %c0_i32_0 = arith.constant 0 : i32
    return %arg0, %c0_i32 : i32, i32
  }
  func.func @transform_1(%arg0: i32, %arg1: i32) -> (i32, i32) {
    %c0_i32 = arith.constant 0 : i32
    %c0_i32_0 = arith.constant 0 : i32
    return %arg0, %c0_i32 : i32, i32
  }
  func.func @transform_2(%arg0: i32, %arg1: i32) -> (i32, i32) {
    %c0_i32 = arith.constant 0 : i32
    %c0_i32_0 = arith.constant 0 : i32
    %c0_i32_1 = arith.constant 0 : i32
    return %c0_i32, %c0_i32_0 : i32, i32
  }
  func.func @transform_3(%arg0: i32, %arg1: i32) -> (i32, i32) {
    %c0_i32 = arith.constant 0 : i32
    %c0_i32_0 = arith.constant 0 : i32
    %c0_i32_1 = arith.constant 0 : i32
    return %c0_i32, %c0_i32_0 : i32, i32
  }
  func.func @transform_4(%arg0: i32, %arg1: i32) -> (i32, i32) {
    %c0_i32 = arith.constant 0 : i32
    %c0_i32_0 = arith.constant 0 : i32
    %c0_i32_1 = arith.constant 0 : i32
    return %c0_i32, %c0_i32_0 : i32, i32
  }
  func.func @transform_5(%arg0: i32, %arg1: i32) -> (i32, i32) {
    %c0_i32 = arith.constant 0 : i32
    %c0_i32_0 = arith.constant 0 : i32
    %c0_i32_1 = arith.constant 0 : i32
    return %c0_i32, %c0_i32_0 : i32, i32
  }
  func.func @transform_6(%arg0: i32, %arg1: i32) -> (i32, i32) {
    %c0_i32 = arith.constant 0 : i32
    %c0_i32_0 = arith.constant 0 : i32
    %c0_i32_1 = arith.constant 0 : i32
    return %c0_i32, %c0_i32_0 : i32, i32
  }
  func.func @transform_7(%arg0: i32, %arg1: i32) -> (i32, i32) {
    %c0_i32 = arith.constant 0 : i32
    %c0_i32_0 = arith.constant 0 : i32
    %c0_i32_1 = arith.constant 0 : i32
    return %c0_i32, %c0_i32_0 : i32, i32
  }
  func.func @transform_8(%arg0: i32, %arg1: i32) -> (i32, i32) {
    %c0_i32 = arith.constant 0 : i32
    %c0_i32_0 = arith.constant 0 : i32
    %c0_i32_1 = arith.constant 0 : i32
    return %c0_i32, %c0_i32_0 : i32, i32
  }
  func.func @transform_9(%arg0: i32, %arg1: i32) -> (i32, i32) {
    %c0_i32 = arith.constant 0 : i32
    %c0_i32_0 = arith.constant 0 : i32
    %c0_i32_1 = arith.constant 0 : i32
    return %c0_i32, %c0_i32_0 : i32, i32
  }
  func.func @transform_10(%arg0: i32, %arg1: i32) -> (i32, i32) {
    %c0_i32 = arith.constant 0 : i32
    %c0_i32_0 = arith.constant 0 : i32
    %c0_i32_1 = arith.constant 0 : i32
    return %c0_i32, %c0_i32_0 : i32, i32
  }
  func.func @transform_11(%arg0: i32, %arg1: i32) -> (i32, i32) {
    %c0_i32 = arith.constant 0 : i32
    %c0_i32_0 = arith.constant 0 : i32
    %c0_i32_1 = arith.constant 0 : i32
    return %c0_i32, %c0_i32_0 : i32, i32
  }
  func.func @transform_12(%arg0: i32, %arg1: i32) -> (i32, i32) {
    %c0_i32 = arith.constant 0 : i32
    %c0_i32_0 = arith.constant 0 : i32
    %c0_i32_1 = arith.constant 0 : i32
    return %c0_i32, %c0_i32_0 : i32, i32
  }
  func.func @transform_13(%arg0: i32, %arg1: i32) -> (i32, i32) {
    %c0_i32 = arith.constant 0 : i32
    %c0_i32_0 = arith.constant 0 : i32
    %c0_i32_1 = arith.constant 0 : i32
    return %c0_i32, %c0_i32_0 : i32, i32
  }
  func.func @transform_14(%arg0: i32, %arg1: i32) -> (i32, i32) {
    %c0_i32 = arith.constant 0 : i32
    %c0_i32_0 = arith.constant 0 : i32
    %c0_i32_1 = arith.constant 0 : i32
    return %c0_i32, %c0_i32_0 : i32, i32
  }
  func.func @transform_15(%arg0: i32, %arg1: i32) -> (i32, i32) {
    %c0_i32 = arith.constant 0 : i32
    %c0_i32_0 = arith.constant 0 : i32
    %c0_i32_1 = arith.constant 0 : i32
    return %c0_i32, %c0_i32_0 : i32, i32
  }
  func.func @transform_16(%arg0: i32, %arg1: i32) -> (i32, i32, i32) {
    %c0_i32 = arith.constant 0 : i32
    %c0_i32_0 = arith.constant 0 : i32
    %c0_i32_1 = arith.constant 0 : i32
    return %arg1, %c0_i32, %c0_i32_0 : i32, i32, i32
  }
  func.func @transform_17(%arg0: i32, %arg1: i32) -> (i32, i32, i32) {
    %c0_i32 = arith.constant 0 : i32
    %c0_i32_0 = arith.constant 0 : i32
    %c0_i32_1 = arith.constant 0 : i32
    return %arg1, %c0_i32, %c0_i32_0 : i32, i32, i32
  }
  func.func @transform_18(%arg0: i32, %arg1: i32) -> (i32, i32, i32) {
    %c0_i32 = arith.constant 0 : i32
    %c0_i32_0 = arith.constant 0 : i32
    %c0_i32_1 = arith.constant 0 : i32
    return %arg1, %c0_i32, %c0_i32_0 : i32, i32, i32
  }
  func.func @transform_19(%arg0: i32, %arg1: i32) -> (i32, i32, i32) {
    %c0_i32 = arith.constant 0 : i32
    %c0_i32_0 = arith.constant 0 : i32
    %c0_i32_1 = arith.constant 0 : i32
    return %arg1, %c0_i32, %c0_i32_0 : i32, i32, i32
  }
  func.func @transform_20(%arg0: i32, %arg1: i32) -> (i32, i32, i32) {
    %c0_i32 = arith.constant 0 : i32
    %c0_i32_0 = arith.constant 0 : i32
    %c0_i32_1 = arith.constant 0 : i32
    return %arg1, %c0_i32, %c0_i32_0 : i32, i32, i32
  }
  func.func @transform_21(%arg0: i32, %arg1: i32) -> (i32, i32, i32) {
    %c0_i32 = arith.constant 0 : i32
    %c0_i32_0 = arith.constant 0 : i32
    %c0_i32_1 = arith.constant 0 : i32
    return %arg1, %c0_i32, %c0_i32_0 : i32, i32, i32
  }
  func.func @transform_22(%arg0: i32, %arg1: i32) -> (i32, i32) {
    %c0_i32 = arith.constant 0 : i32
    %c0_i32_0 = arith.constant 0 : i32
    return %arg0, %c0_i32 : i32, i32
  }
}

</mosaic_0001>

<bundles_post_ra>
// kernel: tpu_custom_call.1
= control target key start
LH: loop header
LB: loop body
LE: loop exit
PB: predicated region body
PF: predicated region fallthrough
CT: control target
= control target key end

     0   :  { %s4184_s0 = inlined_call_operand.hbm [shape: bf16[16,128], index: 0, kind: input, shape index: {}]   ;;  %s4185_s1 = inlined_call_operand.hbm [shape: bf16[16,128], index: 1, kind: input, shape index: {}]   ;;  %s4186_s2 = inlined_call_operand.hbm [shape: bf16[128,256], index: 2, kind: input, shape index: {}]   ;;  %s4187_s3 = inlined_call_operand.vmem [shape: f32[1,256], index: 3, kind: input, shape index: {}]   ;;  %s4188_s4 = inlined_call_operand.hbm [shape: bf16[128,128], index: 4, kind: input, shape index: {}]   ;;  %s4189_s5 = inlined_call_operand.vmem [shape: f32[1,128], index: 5, kind: input, shape index: {}]   ;;  %s4190_s6 = inlined_call_operand.hbm [shape: f32[128,128], index: 6, kind: input, shape index: {}]   ;;  %s4191_s7 = inlined_call_operand.vmem [shape: f32[1,128], index: 7, kind: input, shape index: {}]   ;;  %s4192_s8 = inlined_call_operand.vmem [shape: f32[1,128], index: 8, kind: input, shape index: {}]   ;;  %s4193_s9 = inlined_call_operand.hbm [shape: bf16[128,256], index: 9, kind: input, shape index: {}]   ;;  %s4194_s10 = inlined_call_operand.hbm [shape: bf16[128,256], index: 10, kind: input, shape index: {}]   ;;  %s4195_s11 = inlined_call_operand.vmem [shape: f32[1,256], index: 11, kind: input, shape index: {}]   ;;  %s4196_s12 = inlined_call_operand.hbm [shape: bf16[128,128], index: 12, kind: input, shape index: {}]   ;;  %s4197_s13 = inlined_call_operand.vmem [shape: f32[1,128], index: 13, kind: input, shape index: {}]   ;;  %s4198_s14 = inlined_call_operand.vmem [shape: f32[1,128], index: 14, kind: input, shape index: {}]   ;;  %s4199_s15 = inlined_call_operand.vmem [shape: f32[1,128], index: 15, kind: input, shape index: {}]   ;;  %s4200_s16 = inlined_call_operand.hbm [shape: bf16[2,128,256], index: 16, kind: input, shape index: {}]   ;;  %s4201_s17 = inlined_call_operand.vmem [shape: f32[2,1,256], index: 17, kind: input, shape index: {}]   ;;  %s4202_s18 = inlined_call_operand.hbm [shape: bf16[2,128,128], index: 18, kind: input, shape index: {}]   ;;  %s4203_s19 = inlined_call_operand.vmem [shape: f32[2,1,128], index: 19, kind: input, shape index: {}]   ;;  %s4204_s20 = inlined_call_operand.vmem [shape: f32[2,1,128], index: 20, kind: input, shape index: {}]   ;;  %s4205_s21 = inlined_call_operand.vmem [shape: f32[2,1,128], index: 21, kind: input, shape index: {}]   ;;  %s4206_s22 = inlined_call_operand.hbm [shape: f32[16,128], index: 22, kind: output, shape index: {}]  }
   0x1   :  { %4235 = sst [smem:[#allocation29_spill]] %s4184_s0 }
   0x2   :  { %4236 = sst [smem:[#allocation30_spill]] %s4185_s1 }
   0x3   :  { %4237 = sst [smem:[#allocation31_spill]] %s4186_s2 }
   0x4   :  { %4238 = sst [smem:[#allocation32_spill]] %s4187_s3 }
   0x5   :  { %4239 = sst [smem:[#allocation33_spill]] %s4188_s4 }
   0x6   :  { %4240 = sst [smem:[#allocation34_spill]] %s4189_s5 }
   0x7   :  { %4241 = sst [smem:[#allocation35_spill]] %s4190_s6 }
   0x8   :  { %4242 = sst [smem:[#allocation36_spill]] %s4191_s7 }
   0x9   :  { %4243 = sst [smem:[#allocation37_spill]] %s4192_s8 }
   0xa   :  { %4244 = sst [smem:[#allocation38_spill]] %s4193_s9 }
   0xb   :  { %4245 = sst [smem:[#allocation39_spill]] %s4195_s11 }
   0xc   :  { %4246 = sst [smem:[#allocation40_spill]] %s4197_s13 }
   0xd   :  { %4247 = sst [smem:[#allocation41_spill]] %s4198_s14 }
   0xe   :  { %4248 = sst [smem:[#allocation42_spill]] %s4199_s15 }
   0xf   :  { %4249 = sst [smem:[#allocation43_spill]] %s4200_s16 }
  0x10   :  { %4250 = sst [smem:[#allocation44_spill]] %s4201_s17 }
  0x11   :  { %4251 = sst [smem:[#allocation45_spill]] %s4203_s19 }
  0x12   :  { %4252 = sst [smem:[#allocation46_spill]] %s4204_s20 }
  0x13   :  { %4253 = sst [smem:[#allocation47_spill]] %s4205_s21 }
  0x14   :  { %4254 = sst [smem:[#allocation48_spill]] %s4206_s22 }
  0x15   :  { %27 = vsyncpa [#allocation3], 0 }
  0x16   :  { %28 = vsyncpa [#allocation6], 0 }
  0x17   :  { %29 = vsyncpa [#allocation9], 0 }
  0x18   :  { %30 = vsyncpa [#allocation12], 0 }
  0x19   :  { %31 = vsyncpa [#allocation15], 0 }
  0x1a   :  { %32 = vsyncpa [#allocation4], 0  ;;  %s3624_s3 = smov 0   ;;  %s3626_s28 = smov 0  }
  0x1b   :  { %s3628_s29 = smov 0   ;;  %s3630_s30 = smov 0  }
  0x1c   :  { %s3632_s4 = smov 0   ;;  %s3634_s0 = smov 0  }
  0x1d LB: > { %4255 = sst [smem:[#allocation26_spill]] %s3484_s0  ;;  %s3655_s23 = sadd.s32 4294967295, %s3484_s0   ;;  %s3484_s0 = sphi %s3634_s0, %s38_s0   ;;  %s3480_s4 = sphi %s3632_s4, %s4316_s4   ;;  %s3476_s30 = sphi %s3630_s30, %s4315_s30   ;;  %s3472_s29 = sphi %s3628_s29, %s4314_s29   ;;  %s3468_s28 = sphi %s3626_s28, %s4313_s28   ;;  %s3464_s3 = sphi %s3624_s3, %s4312_s3  }
  0x1e   : > { %p2411_p0 = scmp.ge.s32.totalorder %s3484_s0, 1  ;;  %p4213_p1 = scmp.eq.s32.totalorder %s3655_s23, 0 }
  0x1f   : > { %p583_p2 = scmp.lt.s32.totalorder %s3484_s0, 3  ;;  %s3486_s5 = smov [#allocation2]  }
  0x20   : > { %s598_s24 = sshll.u32 %s3486_s5, 4  ;;  %s3487_s25 = smov [#allocation5]   ;;  %s3664_s24 = int_to_ptr.vmem [resolvable:$true] %s598_s24 }
  0x21   : > { %p3660_p3 = pnand %p2411_p0, %p583_p2  ;;  %s614_s26 = sshll.u32 %s3487_s25, 4  ;;  %s3674_s26 = int_to_ptr.vmem [resolvable:$true] %s614_s26 }
  0x22   : > { %s3488_s2 = smov [#allocation8]   ;;  %s4258_s5 = sld [smem:[#allocation29_spill]] }
  0x23   : > { %s4256_s1 = scalar_select %p3660_p3, 1, 0 }
  0x24   : > { %p2846_p4 = pneg %p3660_p3  ;;  %s3676_s27 = sshll.u32 %s3488_s2, 4  ;;  %s644_s27 = int_to_ptr.vmem [resolvable:$true] %s3676_s27 }
  0x26   : > { %p3670_p5 = pnand %p2846_p4, %p4213_p1 }
  0x28   : > { %s4257_s6 = scalar_select %p3670_p5, 1, 0 }
  0x29   : > { %s3100_s14 = scalar_lea.hbm %s4258_s5, 128  ;;  %p3686_p7 = pneg %p3670_p5 }
  0x2a   : > { %p3101_p6 = scmp.ne.s32.totalorder %s4258_s5, %s3100_s14  ;;  %p3107_p10 = scmp.lt.u32.totalorder %s3100_s14, %s4258_s5 }
  0x2c   : > { %p3103_p8 = pnand %p3686_p7, %p3101_p6 }
  0x2e   : > { %p3104_p9 = pneg %p3103_p8 }
  0x30   : > { %p3109_p11 = pnand %p3107_p10, %p3104_p9 }
  0x32   : > { %3112 = shalt.err (!%p3109_p11)
}
  0x33   : > { %s3113_s11 = scalar_lea.vmem %s3664_s24, 128  ;;  %p3121_p2 = scmp.lt.s32.totalorder %s3664_s24, %s3664_s24 }
  0x34   : > { %p3114_p12 = scmp.ne.s32.totalorder %s3664_s24, %s3113_s11  ;;  %p3122_p4 = scmp.lt.s32.totalorder %s3113_s11, %s3113_s11 }
  0x36   : > { %p3116_p13 = pnand %p3114_p12, %p3686_p7  ;;  %p3123_p6 = por %p3122_p4, %p3121_p2 }
  0x38   : > { %p3117_p0 = pneg %p3116_p13 }
  0x3a   : > { %p3124_p8 = pnand %p3123_p6, %p3117_p0 }
  0x3c   : > { %3127 = shalt.err (!%p3124_p8)
}
  0x3d   : > { %s4216_s13 = smov 64   ;;  %s4218_s14 = smov 4  }
  0x3e   : > { %2849 = dma.hbm_to_vmem [thread:$0]  (!%p3670_p5), %s4258_s5, 128, %s3664_s24, [#allocation3], %s4216_s13, %s4216_s13, %s4218_s14  }
  0x3f   : > { %s4260_s7 = sld [smem:[#allocation30_spill]] }
  0x45   : > { %s3128_s11 = scalar_lea.hbm %s4260_s7, 128 }
  0x46   : > { %p3129_p9 = scmp.ne.s32.totalorder %s4260_s7, %s3128_s11  ;;  %p3135_p12 = scmp.lt.u32.totalorder %s3128_s11, %s4260_s7 }
  0x48   : > { %p3131_p10 = pnand %p3129_p9, %p3686_p7 }
  0x4a   : > { %p3132_p11 = pneg %p3131_p10 }
  0x4c   : > { %p3137_p13 = pnand %p3135_p12, %p3132_p11 }
  0x4e   : > { %3140 = shalt.err (!%p3137_p13)
}
  0x4f   : > { %s3141_s24 = scalar_lea.vmem %s3674_s26, 128  ;;  %p3149_p6 = scmp.lt.s32.totalorder %s3674_s26, %s3674_s26 }
  0x50   : > { %p3142_p0 = scmp.ne.s32.totalorder %s3674_s26, %s3141_s24  ;;  %p3150_p8 = scmp.lt.s32.totalorder %s3141_s24, %s3141_s24 }
  0x52   : > { %p3144_p2 = pnand %p3142_p0, %p3686_p7  ;;  %p3151_p9 = por %p3150_p8, %p3149_p6 }
  0x54   : > { %p3145_p4 = pneg %p3144_p2 }
  0x56   : > { %p3152_p10 = pnand %p3151_p9, %p3145_p4 }
  0x58   : > { %3155 = shalt.err (!%p3152_p10)
}
  0x59   : > { %2852 = dma.hbm_to_vmem [thread:$0]  (!%p3670_p5), %s4260_s7, 128, %s3674_s26, [#allocation6], %s4216_s13, %s4216_s13, %s4218_s14  }
  0x5a   : > { %s4261_s15 = sld [smem:[#allocation33_spill]] }
  0x60   : > { %s3156_s22 = scalar_lea.hbm %s4261_s15, 1024 }
  0x61   : > { %p3157_p11 = scmp.ne.s32.totalorder %s4261_s15, %s3156_s22  ;;  %p3163_p0 = scmp.lt.u32.totalorder %s3156_s22, %s4261_s15 }
  0x63   : > { %p3159_p12 = pnand %p3157_p11, %p3686_p7 }
  0x65   : > { %p3160_p13 = pneg %p3159_p12 }
  0x67   : > { %p3165_p2 = pnand %p3163_p0, %p3160_p13 }
  0x69   : > { %3168 = shalt.err (!%p3165_p2)
}
  0x6a   : > { %s3169_s17 = scalar_lea.vmem %s644_s27, 1024  ;;  %p3177_p9 = scmp.lt.s32.totalorder %s644_s27, %s644_s27 }
  0x6b   : > { %p3170_p4 = scmp.ne.s32.totalorder %s644_s27, %s3169_s17  ;;  %p3178_p10 = scmp.lt.s32.totalorder %s3169_s17, %s3169_s17 }
  0x6d   : > { %p3172_p6 = pnand %p3170_p4, %p3686_p7  ;;  %p3179_p1 = por %p3178_p10, %p3177_p9 }
  0x6f   : > { %p3173_p8 = pneg %p3172_p6 }
  0x71   : > { %p3180_p3 = pnand %p3179_p1, %p3173_p8 }
  0x73   : > { %3183 = shalt.err (!%p3180_p3)
}
  0x74   : > { %2858 = dma.hbm_to_vmem [thread:$0]  (!%p3670_p5), %s4261_s15, 1024, %s644_s27, [#allocation9], %s4216_s13, %s4216_s13, %s4218_s14  }
  0x75   : > { %s3491_s20 = smov [#allocation11]   ;;  %s4262_s9 = sld [smem:[#allocation38_spill]] }
  0x76   : > { %s678_s21 = sshll.u32 %s3491_s20, 4  ;;  %s679_s21 = int_to_ptr.vmem [resolvable:$true] %s678_s21 }
  0x7b   : > { %s3184_s2 = scalar_lea.hbm %s4262_s9, 2048 }
  0x7c   : > { %p3185_p1 = scmp.ne.s32.totalorder %s4262_s9, %s3184_s2  ;;  %p3191_p12 = scmp.lt.u32.totalorder %s3184_s2, %s4262_s9 }
  0x7e   : > { %p3187_p3 = pnand %p3185_p1, %p3686_p7 }
  0x80   : > { %p3188_p11 = pneg %p3187_p3 }
  0x82   : > { %p3193_p13 = pnand %p3191_p12, %p3188_p11 }
  0x84   : > { %3196 = shalt.err (!%p3193_p13)
}
  0x85   : > { %s3197_s27 = scalar_lea.vmem %s679_s21, 2048  ;;  %p3205_p6 = scmp.lt.s32.totalorder %s679_s21, %s679_s21 }
  0x86   : > { %p3198_p0 = scmp.ne.s32.totalorder %s679_s21, %s3197_s27  ;;  %p3206_p8 = scmp.lt.s32.totalorder %s3197_s27, %s3197_s27 }
  0x88   : > { %p3200_p2 = pnand %p3198_p0, %p3686_p7  ;;  %p3207_p9 = por %p3206_p8, %p3205_p6 }
  0x8a   : > { %p3201_p4 = pneg %p3200_p2 }
  0x8c   : > { %p3208_p10 = pnand %p3207_p9, %p3201_p4 }
  0x8e   : > { %3211 = shalt.err (!%p3208_p10)
}
  0x8f   : > { %s4220_s26 = smov 128   ;;  %s4222_s5 = smov 8  }
  0x90   : > { %2864 = dma.hbm_to_vmem [thread:$0]  (!%p3670_p5), %s4262_s9, 2048, %s679_s21, [#allocation12], %s4220_s26, %s4220_s26, %s4222_s5  }
  0x91   : > { %s47_s22 = sadd.s32 1, %s3480_s4  ;;  %s403_s25 = sadd.s32 1, %s3472_s29 }
  0x92   : > { %p48_p1 = scmp.ge.s32.totalorder %s47_s22, 2  ;;  %p410_p3 = scmp.ne.s32.totalorder %s3472_s29, %s3468_s28 }
  0x93   : > { %p411_p11 = scmp.eq.s32.totalorder %s3484_s0, 0  ;;  %p416_p12 = scmp.ne.s32.totalorder %s3468_s28, %s3464_s3 }
  0x94   : > { %s4318_s22 = smov (%p48_p1, %s47_s22), 0  ;;  %p4265_p0 = scmp.eq.s32.totalorder %s3655_s23, 0 }
  0x95   : > { %4263 = sst [smem:[#allocation27_spill]] %s4318_s22  ;;  %p3788_p13 = por %p411_p11, %p410_p3 }
  0x96   : > { %p3794_p2 = por %p4265_p0, %p416_p12  ;;  %s400_s21 = ssub.s32 %s3480_s4, %s4318_s22 }
  0x97   : > { %p2886_p4 = scmp.lt.s32.totalorder %s3484_s0, 2  ;;  %p401_p6 = scmp.eq.s32.totalorder %s400_s21, 0 }
  0x98   : > { %s4266_s11 = scalar_select %p3794_p2, 1, 0 }
  0x99   : > { %s730_s24 = sand.u32 1, %s3484_s0   ;;  %s4224_s17 = sand.u32 1, %s3472_s29  }
  0x9a   : > { %s3804_s27 = scalar_select %p401_p6, %s3472_s29, %s403_s25  }
  0x9b   : > { %s2421_s3 = sshll.u32 %s4224_s17, 7  ;;  %s2543_s19 = sshll.u32 %s3480_s4, 11 }
  0x9c   : > { %4267 = sst [smem:[#allocation28_spill]] %s3804_s27  ;;  %s734_s26 = scalar_lea.vmem [#allocation16], %s2421_s3 }
  0x9d   : > { %s4268_s16 = sld [smem:[#allocation43_spill]]  ;;  %s741_s5 = sshll.u32 %s734_s26, 4  ;;  %s3820_s5 = int_to_ptr.vmem [resolvable:$true] %s741_s5 }
  0x9e   : > { %p3816_p8 = pnand %p2886_p4, %p3788_p13  ;;  %s3494_s25 = smov [#allocation7]  }
  0x9f   : > { %s3822_s17 = sshll.u32 %s3494_s25, 4  ;;  %s3824_s13 = scalar_lea.sflag [#allocation3], %s730_s24  ;;  %s628_s17 = int_to_ptr.vmem [resolvable:$true] %s3822_s17 }
  0xa0   : > { %s4269_s21 = scalar_select %p3816_p8, 1, 0 }
  0xa1   : > { %p4230_p10 = pneg %p3816_p8 }
  0xa3   : > { %s3812_s14 = scalar_lea.hbm %s4268_s16, %s2543_s19  ;;  %s3217_s3 = scalar_lea.hbm %s4268_s16, 4096 }
  0xa4   : > { %s3212_s19 = scalar_lea.hbm %s3812_s14, 2048  ;;  %p3218_p11 = scmp.lt.u32.totalorder %s3812_s14, %s4268_s16 }
  0xa5   : > { %p3213_p9 = scmp.ne.s32.totalorder %s3812_s14, %s3212_s19  ;;  %p3219_p12 = scmp.lt.u32.totalorder %s3217_s3, %s3212_s19 }
  0xa6   : > { %p3221_p0 = scmp.lt.u32.totalorder %s3212_s19, %s3812_s14 }
  0xa7   : > { %p3215_p1 = pnand %p4230_p10, %p3213_p9  ;;  %p3220_p13 = por %p3219_p12, %p3218_p11 }
  0xa9   : > { %p3216_p3 = pneg %p3215_p1  ;;  %p3222_p4 = por %p3221_p0, %p3220_p13 }
  0xab   : > { %p3223_p6 = pnand %p3222_p4, %p3216_p3 }
  0xad   : > { %3226 = shalt.err (!%p3223_p6)
}
  0xae   : > { %s3227_s24 = scalar_lea.vmem %s3820_s5, 2048  ;;  %s3495_s25 = smov [#allocation16]  }
  0xaf   : > { %p3228_p9 = scmp.ne.s32.totalorder %s3820_s5, %s3227_s24  ;;  %s3232_s26 = sshll.u32 %s3495_s25, 4  ;;  %s3233_s26 = int_to_ptr.vmem [resolvable:$false] %s3232_s26 }
  0xb0   : > { %s3234_s7 = scalar_lea.vmem %s3233_s26, 4096  ;;  %p3235_p5 = scmp.lt.s32.totalorder %s3820_s5, %s3233_s26 }
  0xb1   : > { %p3230_p1 = pnand %p3228_p9, %p4230_p10  ;;  %p3236_p11 = scmp.lt.s32.totalorder %s3234_s7, %s3227_s24 }
  0xb3   : > { %p3231_p2 = pneg %p3230_p1  ;;  %p3237_p12 = por %p3236_p11, %p3235_p5 }
  0xb5   : > { %p3238_p13 = pnand %p3237_p12, %p3231_p2 }
  0xb7   : > { %3241 = shalt.err (!%p3238_p13)
}
  0xb8   : > { %s4270_s19 = smov 8   ;;  %s4271_s2 = smov 128  }
  0xb9   : > { %2874 = dma.hbm_to_vmem [thread:$0]  (!%p3816_p8), %s3812_s14, 2048, %s3820_s5, %s3824_s13, %s4271_s2, %s4271_s2, %s4270_s19  }
  0xba   : > { %s4272_s25 = sld [smem:[#allocation31_spill]] }
  0xc0   : > { %s3242_s26 = scalar_lea.hbm %s4272_s25, 2048 }
  0xc1   : > { %p3243_p5 = scmp.ne.s32.totalorder %s4272_s25, %s3242_s26  ;;  %p3249_p0 = scmp.lt.u32.totalorder %s3242_s26, %s4272_s25 }
  0xc3   : > { %p3245_p2 = pnand %p3243_p5, %p3686_p7 }
  0xc5   : > { %p3246_p3 = pneg %p3245_p2 }
  0xc7   : > { %p3251_p4 = pnand %p3249_p0, %p3246_p3 }
  0xc9   : > { %3254 = shalt.err (!%p3251_p4)
}
  0xca   : > { %s3255_s16 = scalar_lea.vmem %s628_s17, 2048  ;;  %p3263_p11 = scmp.lt.s32.totalorder %s628_s17, %s628_s17 }
  0xcb   : > { %p3256_p6 = scmp.ne.s32.totalorder %s628_s17, %s3255_s16  ;;  %p3264_p12 = scmp.lt.s32.totalorder %s3255_s16, %s3255_s16 }
  0xcd   : > { %p3258_p9 = pnand %p3256_p6, %p3686_p7  ;;  %p3265_p13 = por %p3264_p12, %p3263_p11 }
  0xcf   : > { %p3259_p1 = pneg %p3258_p9 }
  0xd1   : > { %p3266_p10 = pnand %p3265_p13, %p3259_p1 }
  0xd3   : > { %3269 = shalt.err (!%p3266_p10)
}
  0xd4   : > { %p4273_p5 = scmp.ne.s32.totalorder %s4257_s6, 0  ;;  %s3496_s15 = smov [#allocation10]  }
  0xd5   : > { %s659_s5 = sshll.u32 %s3496_s15, 4  ;;  %s3497_s3 = smov [#allocation13]   ;;  %s660_s5 = int_to_ptr.vmem [resolvable:$true] %s659_s5 }
  0xd6   : > { %2855 = dma.hbm_to_vmem [thread:$0]  (!%p4273_p5), %s4272_s25, 2048, %s628_s17, [#allocation6], %s4271_s2, %s4271_s2, %s4270_s19  }
  0xd7   : > { %s691_s20 = sshll.u32 %s3497_s3, 4  ;;  %s4274_s24 = sld [smem:[#allocation35_spill]]  ;;  %s692_s20 = int_to_ptr.vmem [resolvable:$true] %s691_s20 }
  0xdd   : > { %s3270_s7 = scalar_lea.hbm %s4274_s24, 2048 }
  0xde   : > { %p3271_p10 = scmp.ne.s32.totalorder %s4274_s24, %s3270_s7  ;;  %p3277_p0 = scmp.lt.u32.totalorder %s3270_s7, %s4274_s24 }
  0xe0   : > { %p3273_p2 = pnand %p3271_p10, %p3686_p7 }
  0xe2   : > { %p3274_p3 = pneg %p3273_p2 }
  0xe4   : > { %p3279_p4 = pnand %p3277_p0, %p3274_p3 }
  0xe6   : > { %3282 = shalt.err (!%p3279_p4)
}
  0xe7   : > { %s3283_s17 = scalar_lea.vmem %s660_s5, 2048  ;;  %p3291_p11 = scmp.lt.s32.totalorder %s660_s5, %s660_s5 }
  0xe8   : > { %p3284_p6 = scmp.ne.s32.totalorder %s660_s5, %s3283_s17  ;;  %p3292_p12 = scmp.lt.s32.totalorder %s3283_s17, %s3283_s17 }
  0xea   : > { %p3286_p9 = pnand %p3284_p6, %p3686_p7  ;;  %p3293_p13 = por %p3292_p12, %p3291_p11 }
  0xec   : > { %p3287_p1 = pneg %p3286_p9 }
  0xee   : > { %p3294_p8 = pnand %p3293_p13, %p3287_p1 }
  0xf0   : > { %3297 = shalt.err (!%p3294_p8)
}
  0xf1   : > { %2861 = dma.hbm_to_vmem [thread:$0]  (!%p4273_p5), %s4274_s24, 2048, %s660_s5, [#allocation9], %s4271_s2, %s4271_s2, %s4270_s19  }
  0xf2   : > { %s3298_s15 = scalar_lea.hbm %s4194_s10, 2048 }
  0xf3   : > { %p3299_p10 = scmp.ne.s32.totalorder %s4194_s10, %s3298_s15  ;;  %p3305_p3 = scmp.lt.u32.totalorder %s3298_s15, %s4194_s10 }
  0xf5   : > { %p3301_p8 = pnand %p3299_p10, %p3686_p7 }
  0xf7   : > { %p3302_p2 = pneg %p3301_p8 }
  0xf9   : > { %p3307_p0 = pnand %p3305_p3, %p3302_p2 }
  0xfb   : > { %3310 = shalt.err (!%p3307_p0)
}
  0xfc   : > { %s3311_s9 = scalar_lea.vmem %s692_s20, 2048  ;;  %p3319_p1 = scmp.lt.s32.totalorder %s692_s20, %s692_s20 }
  0xfd   : > { %p3312_p4 = scmp.ne.s32.totalorder %s692_s20, %s3311_s9  ;;  %p3320_p11 = scmp.lt.s32.totalorder %s3311_s9, %s3311_s9 }
  0xff   : > { %p3314_p6 = pnand %p3312_p4, %p3686_p7  ;;  %p3321_p12 = por %p3320_p11, %p3319_p1 }
 0x101   : > { %p3315_p9 = pneg %p3314_p6 }
 0x103   : > { %p3322_p13 = pnand %p3321_p12, %p3315_p9 }
 0x105   : > { %3325 = shalt.err (!%p3322_p13)
}
 0x106   : > { %2867 = dma.hbm_to_vmem [thread:$0]  (!%p4273_p5), %s4194_s10, 2048, %s692_s20, [#allocation12], %s4271_s2, %s4271_s2, %s4270_s19  }
 0x107   : > { %s3498_s0 = smov [#allocation14]   ;;  %s4275_s27 = sand.u32 1, %s3472_s29  }
 0x108   : > { %s707_s22 = sshll.u32 %s3498_s0, 4  ;;  %s2424_s14 = sshll.u32 %s4275_s27, 6  ;;  %s708_s22 = int_to_ptr.vmem [resolvable:$true] %s707_s22 }
 0x109   : > { %s3326_s26 = scalar_lea.hbm %s4196_s12, 1024 }
 0x10a   : > { %p3327_p10 = scmp.ne.s32.totalorder %s4196_s12, %s3326_s26  ;;  %p3333_p3 = scmp.lt.u32.totalorder %s3326_s26, %s4196_s12 }
 0x10c   : > { %p3329_p8 = pnand %p3327_p10, %p3686_p7 }
 0x10e   : > { %p3330_p2 = pneg %p3329_p8 }
 0x110   : > { %p3335_p0 = pnand %p3333_p3, %p3330_p2 }
 0x112   : > { %3338 = shalt.err (!%p3335_p0)
}
 0x113   : > { %s3339_s19 = scalar_lea.vmem %s708_s22, 1024  ;;  %p3347_p1 = scmp.lt.s32.totalorder %s708_s22, %s708_s22 }
 0x114   : > { %p3340_p4 = scmp.ne.s32.totalorder %s708_s22, %s3339_s19  ;;  %p3348_p11 = scmp.lt.s32.totalorder %s3339_s19, %s3339_s19 }
 0x116   : > { %p3342_p6 = pnand %p3340_p4, %p3686_p7  ;;  %p3349_p12 = por %p3348_p11, %p3347_p1 }
 0x118   : > { %p3343_p9 = pneg %p3342_p6 }
 0x11a   : > { %p3350_p13 = pnand %p3349_p12, %p3343_p9 }
 0x11c   : > { %3353 = shalt.err (!%p3350_p13)
}
 0x11d   : > { %s4276_s2 = smov 4   ;;  %s4277_s20 = smov 64  }
 0x11e   : > { %2870 = dma.hbm_to_vmem [thread:$0]  (!%p4273_p5), %s4196_s12, 1024, %s708_s22, [#allocation15], %s4277_s20, %s4277_s20, %s4276_s2  }
 0x11f   : > { %s2544_s27 = sshll.u32 %s3480_s4, 10  ;;  %s762_s8 = scalar_lea.vmem [#allocation17], %s2424_s14 }
 0x120   : > { %s769_s15 = sshll.u32 %s762_s8, 4  ;;  %s3946_s16 = scalar_lea.hbm %s4202_s18, %s2544_s27  ;;  %s3948_s15 = int_to_ptr.vmem [resolvable:$true] %s769_s15 }
 0x121   : > { %s3354_s6 = scalar_lea.hbm %s3946_s16, 1024  ;;  %p4278_p10 = scmp.ne.s32.totalorder %s4269_s21, 0 }
 0x122   : > { %p3355_p7 = scmp.ne.s32.totalorder %s3946_s16, %s3354_s6  ;;  %s3359_s7 = scalar_lea.hbm %s4202_s18, 2048 }
 0x123   : > { %p4279_p8 = pneg %p4278_p10  ;;  %p3360_p3 = scmp.lt.u32.totalorder %s3946_s16, %s4202_s18 }
 0x124   : > { %p3361_p0 = scmp.lt.u32.totalorder %s3359_s7, %s3354_s6  ;;  %p3363_p6 = scmp.lt.u32.totalorder %s3354_s6, %s3946_s16 }
 0x125   : > { %p3357_p2 = pnand %p3355_p7, %p4279_p8 }
 0x126   : > { %p3362_p4 = por %p3361_p0, %p3360_p3 }
 0x127   : > { %p3358_p5 = pneg %p3357_p2 }
 0x128   : > { %p3364_p9 = por %p3363_p6, %p3362_p4 }
 0x12a   : > { %p3365_p1 = pnand %p3364_p9, %p3358_p5 }
 0x12c   : > { %3368 = shalt.err (!%p3365_p1)
}
 0x12d   : > { %s3369_s19 = scalar_lea.vmem %s3948_s15, 1024  ;;  %p4280_p12 = pmov %p4279_p8 }
 0x12e   : > { %p3370_p11 = scmp.ne.s32.totalorder %s3948_s15, %s3369_s19  ;;  %s3499_s17 = smov [#allocation17]  }
 0x12f   : > { %s3374_s0 = sshll.u32 %s3499_s17, 4  ;;  %s3375_s0 = int_to_ptr.vmem [resolvable:$false] %s3374_s0 }
 0x130   : > { %p3372_p13 = pnand %p3370_p11, %p4280_p12  ;;  %s3376_s27 = scalar_lea.vmem %s3375_s0, 2048 }
 0x131   : > { %p3377_p8 = scmp.lt.s32.totalorder %s3948_s15, %s3375_s0  ;;  %p3378_p2 = scmp.lt.s32.totalorder %s3376_s27, %s3369_s19 }
 0x132   : > { %p3373_p7 = pneg %p3372_p13 }
 0x133   : > { %p3379_p3 = por %p3378_p2, %p3377_p8 }
 0x135   : > { %p3380_p0 = pnand %p3379_p3, %p3373_p7 }
 0x137   : > { %3383 = shalt.err (!%p3380_p0)
}
 0x138   : > { %2877 = dma.hbm_to_vmem [thread:$0]  (!%p4278_p10), %s3946_s16, 1024, %s3948_s15, %s3824_s13, %s4277_s20, %s4277_s20, %s4276_s2  }
 0x139   : > { %p4281_p5 = scmp.ne.s32.totalorder %s4256_s1, 0 }
 0x13a   : > { %p4282_p4 = scmp.eq.s32.totalorder (!%p4281_p5), %s3655_s23, 0 }
 0x13b   : > { %799 = sbr.rel (%p4281_p5) target bundleno = 2328 (0x918), region = 108 }
 0x142   : > { %3435 = dma.done.wait (%p4282_p4), [#allocation3], 128   ;;  %p4283_p6 = pmov %p4282_p4 }
 0x143   : > { %p4284_p9 = pmov %p4282_p4 }
 0x144   : > { %3437 = vsyncadd (%p4283_p6), [#allocation3], 4294967168 }
 0x145   : > { %3439 = dma.done.wait (%p4284_p9), [#allocation6], 2176   ;;  %p4285_p1 = pmov %p4282_p4 }
 0x147   : > { %3441 = vsyncadd (%p4285_p1), [#allocation6], 4294965120  ;;  %p4286_p11 = pmov %p4285_p1 }
 0x148   : > { %p4287_p10 = pmov %p4285_p1 }
 0x149   : > { %3443 = dma.done.wait (%p4286_p11), [#allocation9], 3072  }
 0x14a   : > { %3445 = vsyncadd (%p4287_p10), [#allocation9], 4294964224  ;;  %p4288_p12 = pmov %p4285_p1 }
 0x14b   : > { %p4289_p13 = pmov %p4285_p1 }
 0x14c   : > { %3447 = dma.done.wait (%p4288_p12), [#allocation12], 4096  }
 0x14d   : > { %3449 = vsyncadd (%p4289_p13), [#allocation12], 4294963200  ;;  %p4290_p7 = pmov %p4285_p1 }
 0x14e   : > { %p4291_p8 = pmov %p4285_p1 }
 0x14f   : > { %3451 = dma.done.wait (%p4290_p7), [#allocation15], 1024  }
 0x150   : > { %3453 = vsyncadd (%p4291_p8), [#allocation15], 4294966272  ;;  %s833_s1 = sand.u32 1, %s3655_s23   ;;  %s835_s21 = sand.u32 1, %s3468_s28  }
 0x151   : > { %s2436_s13 = sshll.u32 %s835_s21, 7  ;;  %s834_s2 = scalar_lea.sflag [#allocation3], %s833_s1 }
 0x152   : > { %s4001_s20 = scalar_lea.vmem [#allocation16], %s2436_s13  ;;  %p4292_p2 = scmp.ne.s32.totalorder %s4266_s11, 0 }
 0x154   : > { %3455 = dma.done.wait (%p4292_p2), %s834_s2, 3072  }
 0x155   : > { %3457 = vsyncadd (%p4292_p2), %s834_s2, 4294964224  ;;  %s2437_s8 = sshll.u32 %s835_s21, 6  ;;  %p922_p3 = scmp.lt.s32.totalorder %s3476_s30, 1 }
 0x156   : > { %s4293_s6 = sld [smem:[#allocation45_spill]]  ;;  %s4294_s9 = sld [smem:[#allocation44_spill]] }
 0x157   : > { %s4009_s15 = scalar_select %p922_p3, %s3476_s30, 1 }
 0x158   : > { %s4295_s17 = sld [smem:[#allocation46_spill]]  ;;  %s4296_s21 = sld [smem:[#allocation47_spill]] }
 0x159   : > { %s2438_s3 = sshll.u32 %s4009_s15, 1  ;;  %s4029_s2 = scalar_lea.vmem [#allocation17], %s2437_s8 }
 0x15a   : > { %p2439_p0 = scmp.ne.s32.totalorder %s3476_s30, 0 }
 0x15b   : > { %v2966_v0 = vld [vmem:[#allocation7 + $0x4] ss:$8 sps:$4 sm:$0xff] (!%p2439_p0)   ;;  %v2968_v1 = vld [vmem:[#allocation7] ss:$8 sps:$4 sm:$0xff] (!%p2439_p0)   ;;  %v3500_v2 = vmov (!%p2439_p0), 0   ;;  %v3501_v3 = vmov (!%p2439_p0), 0.0   ;;  %v961_v48 = vlaneseq (!%p2439_p0) }
 0x15c   : > { %s928_s22 = scalar_lea.vmem %s4293_s6, %s4009_s15  ;;  %s4019_s11 = scalar_lea.vmem %s4294_s9, %s2438_s3  ;;  %1089 = vmatprep.mubr.bf16.mxu0 (!%p2439_p0), %v3500_v2  ;;  %2608 = vmatprep.subr.bf16.mxu1 (!%p2439_p0), %v3501_v3  ;;  %v2969_v4 = vld [vmem:[#allocation7 + $0x14] ss:$8 sps:$4 sm:$0xff] (!%p2439_p0)   ;;  %v2971_v5 = vld [vmem:[#allocation7 + $0x10] ss:$8 sps:$4 sm:$0xff] (!%p2439_p0)   ;;  %v2972_v6 = vld [vmem:[#allocation7 + $0x24] ss:$8 sps:$4 sm:$0xff] (!%p2439_p0)  }
 0x15d   : > { %940 = sbr.rel (%p2439_p0) target bundleno = 1665 (0x681), region = 152  ;;  %1057 = vmatprep.subr.bf16.mxu0 (!%p2439_p0), %v2966_v0  ;;  %v2974_v7 = vld [vmem:[#allocation7 + $0x20] ss:$8 sps:$4 sm:$0xff] (!%p2439_p0)   ;;  %v2975_v8 = vld [vmem:[#allocation7 + $0x34] ss:$8 sps:$4 sm:$0xff] (!%p2439_p0)   ;;  %vm3502_vm0 = vmmov (!%p2439_p0), 0  }
 0x15e   : > { %s931_s0 = scalar_lea.vmem %s4295_s17, %s4009_s15  ;;  %s934_s13 = scalar_lea.vmem %s4296_s21, %s4009_s15  ;;  %1058 = vmatpush1.bf16.msra.mxu0 (!%p2439_p0), %v2968_v1  ;;  %v2977_v9 = vld [vmem:[#allocation7 + $0x30] ss:$8 sps:$4 sm:$0xff] (!%p2439_p0)   ;;  %v2978_v10 = vld [vmem:[#allocation7 + $0x44] ss:$8 sps:$4 sm:$0xff] (!%p2439_p0)   ;;  %v2980_v13 = vld [vmem:[#allocation7 + $0x40] ss:$8 sps:$4 sm:$0xff] (!%p2439_p0)   ;;  %2624 = vmatprep.mubr.msk.bf16.mxu1 (!%p2439_p0), %vm3502_vm0, %v3501_v3 }
 0x15f   : > { %1059 = vmatprep.subr.bf16.mxu0 (!%p2439_p0), %v2969_v4  ;;  %v2991_v11 = vld [vmem:[#allocation8] sm:$0xff] (!%p2439_p0)   ;;  %v2992_v12 = vld [vmem:[#allocation8 + $0x8] sm:$0xff] (!%p2439_p0)   ;;  %v2981_v14 = vld [vmem:[#allocation7 + $0x54] ss:$8 sps:$4 sm:$0xff] (!%p2439_p0)   ;;  %v4043_v49 = vshrl.u32 (!%p2439_p0), %v961_v48, 7  ;;  %s4297_s3 = sld [smem:[#allocation32_spill]] (!%p2439_p0) }
 0x160   : > { %2609 = vmatpush3.bf16.msra.mxu1 (!%p2439_p0), %v2991_v11  ;;  %v2983_v15 = vld [vmem:[#allocation7 + $0x50] ss:$8 sps:$4 sm:$0xff] (!%p2439_p0)   ;;  %v2984_v17 = vld [vmem:[#allocation7 + $0x64] ss:$8 sps:$4 sm:$0xff] (!%p2439_p0)   ;;  %v2986_v19 = vld [vmem:[#allocation7 + $0x60] ss:$8 sps:$4 sm:$0xff] (!%p2439_p0)  }
 0x161   : > { %2610 = vmatprep.subr.bf16.mxu1 (!%p2439_p0), %v3501_v3  ;;  %v2993_v16 = vld [vmem:[#allocation8 + $0x10] sm:$0xff] (!%p2439_p0)   ;;  %v2994_v18 = vld [vmem:[#allocation8 + $0x18] sm:$0xff] (!%p2439_p0)   ;;  %v2995_v21 = vld [vmem:[#allocation8 + $0x20] sm:$0xff] (!%p2439_p0)   ;;  %v963_v50 = vsub.s32 (!%p2439_p0), 0, %v4043_v49  ;;  %v967_v4 = vsub.s32 (!%p2439_p0), 1, %v4043_v49  ;;  %s4298_s6 = sld [smem:[#allocation34_spill]] (!%p2439_p0) }
 0x162   : > { %1060 = vmatpush1.bf16.msra.mxu0 (!%p2439_p0), %v2971_v5  ;;  %v2987_v20 = vld [vmem:[#allocation7 + $0x74] ss:$8 sps:$4 sm:$0xff] (!%p2439_p0)   ;;  %v2989_v22 = vld [vmem:[#allocation7 + $0x70] ss:$8 sps:$4 sm:$0xff] (!%p2439_p0)   ;;  %v2996_v24 = vld [vmem:[#allocation8 + $0x28] sm:$0xff] (!%p2439_p0)   ;;  %s4299_s9 = sld [smem:[#allocation36_spill]] (!%p2439_p0) }
 0x163   : > { %1061 = vmatprep.subr.bf16.mxu0 (!%p2439_p0), %v2972_v6  ;;  %v2990_v23 = vld [vmem:[#allocation2] sm:$0xff] (!%p2439_p0)   ;;  %v2998_v26 = vld [vmem:[#allocation8 + $0x38] sm:$0xff] (!%p2439_p0)   ;;  %v1217_v27 = vld [vmem:[#allocation10] sm:$0xff] (!%p2439_p0)  ;;  %s4300_s17 = sld [smem:[#allocation37_spill]] (!%p2439_p0)  ;;  %s4301_s21 = sld [smem:[#allocation39_spill]] (!%p2439_p0) }
 0x164   : > { %2611 = vmatpush3.bf16.msra.mxu1 %v2992_v12  ;;  %v2997_v25 = vld [vmem:[#allocation8 + $0x30] sm:$0xff]   ;;  %v1218_v28 = vld [vmem:[#allocation10 + $0x8] sm:$0xff]  ;;  %v1220_v31 = vld [vmem:[#allocation10 + $0x18] sm:$0xff] }
 0x165   : > { %2612 = vmatprep.subr.bf16.mxu1 %v3501_v3  ;;  %v2738_v29 = vpack.c.bf16 %v1218_v28, %v1217_v27  ;;  %v1219_v30 = vld [vmem:[#allocation10 + $0x10] sm:$0xff]  ;;  %v1221_v33 = vld [vmem:[#allocation10 + $0x20] sm:$0xff]  ;;  %v1222_v34 = vld [vmem:[#allocation10 + $0x28] sm:$0xff] }
 0x166   : > { %1062 = vmatpush1.bf16.msra.mxu0 %v2974_v7  ;;  %v2742_v32 = vpack.c.bf16 %v1220_v31, %v1219_v30  ;;  %v2746_v35 = vpack.c.bf16 %v1222_v34, %v1221_v33  ;;  %v1223_v36 = vld [vmem:[#allocation10 + $0x30] sm:$0xff]  ;;  %v1224_v37 = vld [vmem:[#allocation10 + $0x38] sm:$0xff]  ;;  %v1225_v39 = vld [vmem:[#allocation10 + $0x40] sm:$0xff] }
 0x167   : > { %1063 = vmatprep.subr.bf16.mxu0 %v2975_v8  ;;  %v2750_v38 = vpack.c.bf16 %v1224_v37, %v1223_v36  ;;  %v1226_v40 = vld [vmem:[#allocation10 + $0x48] sm:$0xff]  ;;  %v1227_v42 = vld [vmem:[#allocation10 + $0x50] sm:$0xff]  ;;  %v1228_v43 = vld [vmem:[#allocation10 + $0x58] sm:$0xff] }
 0x168   : > { %2613 = vmatpush3.bf16.msra.mxu1 %v2993_v16  ;;  %v2754_v41 = vpack.c.bf16 %v1226_v40, %v1225_v39  ;;  %v2758_v44 = vpack.c.bf16 %v1228_v43, %v1227_v42  ;;  %v1229_v45 = vld [vmem:[#allocation10 + $0x60] sm:$0xff]  ;;  %v1230_v46 = vld [vmem:[#allocation10 + $0x68] sm:$0xff]  ;;  %v959_v51 = vld [vmem:[%s4297_s3] sm:$0x3]  ;;  %s4302_s3 = sld [smem:[#allocation40_spill]] }
 0x169   : > { %2614 = vmatprep.subr.bf16.mxu1 %v3501_v3  ;;  %v2762_v47 = vpack.c.bf16 %v1230_v46, %v1229_v45  ;;  %v964_v52 = vrot.slane %v959_v51, %v963_v50  ;;  %v1231_v62 = vld [vmem:[#allocation10 + $0x70] sm:$0xff]  ;;  %v1232_v63 = vld [vmem:[#allocation10 + $0x78] sm:$0xff]  ;;  %v3001_v1 = vld [vmem:[#allocation13 + $0x4] ss:$8 sps:$4 sm:$0xff]   ;;  %v968_v5 = vrot.slane %v959_v51, %v967_v4 }
 0x16a   : > { %1064 = vmatpush1.bf16.msra.mxu0 %v2977_v9  ;;  %v2766_v0 = vpack.c.bf16 %v1232_v63, %v1231_v62  ;;  %v2457_v6 = vld [vmem:[%s4298_s6] ss:$0 sm:$0xff]  ;;  %v2999_v16 = vld [vmem:[#allocation13] ss:$8 sps:$4 sm:$0xff]   ;;  %v3016_v28 = vld [vmem:[#allocation13 + $0x54] ss:$8 sps:$4 sm:$0xff]  }
 0x16b   : > { %1065 = vmatprep.subr.bf16.mxu0 %v2978_v10  ;;  %v3011_v27 = vld [vmem:[#allocation13 + $0x40] ss:$8 sps:$4 sm:$0xff]   ;;  %v3019_v30 = vld [vmem:[#allocation13 + $0x64] ss:$8 sps:$4 sm:$0xff]   ;;  %v3020_v33 = vld [vmem:[#allocation13 + $0x70] ss:$8 sps:$4 sm:$0xff]  }
 0x16c   : > { %2615 = vmatpush3.bf16.msra.mxu1 %v2994_v18  ;;  %v3017_v31 = vld [vmem:[#allocation13 + $0x60] ss:$8 sps:$4 sm:$0xff]   ;;  %v3025_v34 = vld [vmem:[#allocation11 + $0x4] ss:$8 sps:$4 sm:$0xff]   ;;  %v3029_v37 = vld [vmem:[#allocation11 + $0x14] ss:$8 sps:$4 sm:$0xff]  }
 0x16d   : > { %2616 = vmatprep.subr.bf16.mxu1 %v3501_v3  ;;  %v3023_v36 = vld [vmem:[#allocation11] ss:$8 sps:$4 sm:$0xff]   ;;  %v3032_v39 = vld [vmem:[#allocation11 + $0x24] ss:$8 sps:$4 sm:$0xff]   ;;  %v3033_v42 = vld [vmem:[#allocation11 + $0x30] ss:$8 sps:$4 sm:$0xff]  }
 0x16e   : > { %1066 = vmatpush1.bf16.msra.mxu0 %v2980_v13  ;;  %v3030_v40 = vld [vmem:[#allocation11 + $0x20] ss:$8 sps:$4 sm:$0xff]   ;;  %v3038_v43 = vld [vmem:[#allocation11 + $0x44] ss:$8 sps:$4 sm:$0xff]   ;;  %v3041_v45 = vld [vmem:[#allocation11 + $0x54] ss:$8 sps:$4 sm:$0xff]  }
 0x16f   : > { %1067 = vmatprep.subr.bf16.mxu0 %v2981_v14  ;;  %v3039_v46 = vld [vmem:[#allocation11 + $0x50] ss:$8 sps:$4 sm:$0xff]   ;;  %v3047_v48 = vld [vmem:[#allocation11 + $0x74] ss:$8 sps:$4 sm:$0xff]   ;;  %s4303_s6 = sld [smem:[#allocation41_spill]] }
 0x170   : > { %2617 = vmatpush3.bf16.msra.mxu1 %v2995_v21  ;;  %v3002_v21 = vld [vmem:[#allocation13 + $0x10] ss:$8 sps:$4 sm:$0xff]  }
 0x171   : > { %2618 = vmatprep.subr.bf16.mxu1 %v3501_v3  ;;  %v3045_v51 = vld [vmem:[#allocation11 + $0x70] ss:$8 sps:$4 sm:$0xff]  }
 0x172   : > { %1068 = vmatpush1.bf16.msra.mxu0 %v2983_v15 }
 0x173   : > { %1069 = vmatprep.subr.bf16.mxu0 %v2984_v17 }
 0x174   : > { %2619 = vmatpush3.bf16.msra.mxu1 %v2996_v24  ;;  %v3010_v24 = vld [vmem:[#allocation13 + $0x34] ss:$8 sps:$4 sm:$0xff]  }
 0x175   : > { %2620 = vmatprep.subr.bf16.mxu1 %v3501_v3 }
 0x176   : > { %1070 = vmatpush1.bf16.msra.mxu0 %v2986_v19  ;;  %v3004_v19 = vld [vmem:[#allocation13 + $0x14] ss:$8 sps:$4 sm:$0xff]  }
 0x177   : > { %1071 = vmatprep.subr.bf16.mxu0 %v2987_v20 }
 0x178   : > { %2621 = vmatpush3.bf16.msra.mxu1 %v2997_v25  ;;  %v3008_v25 = vld [vmem:[#allocation13 + $0x30] ss:$8 sps:$4 sm:$0xff]  }
 0x179   : > { %2622 = vmatprep.subr.bf16.mxu1 %v3501_v3 }
 0x17a   : > { %1072 = vmatpush1.bf16.msra.mxu0 %v2989_v22  ;;  %v3007_v22 = vld [vmem:[#allocation13 + $0x24] ss:$8 sps:$4 sm:$0xff]  }
 0x17b   : > { %2739 = vmatprep.subr.bf16.mxu0 %v2738_v29 }
 0x17c   : > { %2623 = vmatpush3.bf16.msra.mxu1 %v2998_v26  ;;  %v3013_v26 = vld [vmem:[#allocation13 + $0x44] ss:$8 sps:$4 sm:$0xff]  }
 0x17d   : > { %1090 = vmatmul.mubr.bf16.vlgmr.msra.gmra.mrb[0].mxu0 %v2990_v23  ;;  %2771 = vmatprep.subr.bf16.mxu1 %v2738_v29  ;;  %v3005_v23 = vld [vmem:[#allocation13 + $0x20] ss:$8 sps:$4 sm:$0xff]  }
 0x17e   : > { %2741 = vmatpush3.bf16.msra.mxu0 %v2738_v29 }
 0x17f   : > { %2743 = vmatprep.subr.bf16.mxu0 %v2742_v32 }
 0x182   : > { %2745 = vmatpush3.bf16.msra.mxu0 %v2742_v32 }
 0x183   : > { %2747 = vmatprep.subr.bf16.mxu0 %v2746_v35 }
 0x186   : > { %2749 = vmatpush3.bf16.msra.mxu0 %v2746_v35 }
 0x187   : > { %2751 = vmatprep.subr.bf16.mxu0 %v2750_v38 }
 0x18a   : > { %2753 = vmatpush3.bf16.msra.mxu0 %v2750_v38 }
 0x18b   : > { %2755 = vmatprep.subr.bf16.mxu0 %v2754_v41 }
 0x18e   : > { %2757 = vmatpush3.bf16.msra.mxu0 %v2754_v41 }
 0x18f   : > { %2759 = vmatprep.subr.bf16.mxu0 %v2758_v44 }
 0x192   : > { %2761 = vmatpush3.bf16.msra.mxu0 %v2758_v44 }
 0x193   : > { %2763 = vmatprep.subr.bf16.mxu0 %v2762_v47 }
 0x196   : > { %2765 = vmatpush3.bf16.msra.mxu0 %v2762_v47 }
 0x197   : > { %2767 = vmatprep.subr.bf16.mxu0 %v2766_v0 }
 0x19a   : > { %2769 = vmatpush3.bf16.msra.mxu0 %v2766_v0 }
 0x19b   : > { %1536 = vmatprep.subr.bf16.mxu0 %v3001_v1 }
 0x250   : > { %v1091_v53 = vpop.f32.mrb[0].mxu0 }
 0x251   : > { %v1092_v54 = vadd.f32 %v1091_v53, %v964_v52  ;;  %v1093_v55 = vpop.f32.mrb[1].mxu0  ;;  %v3049_v53 = vld [vmem:[#allocation14 + $0x8] sm:$0xff]  }
 0x252   : > { %v1095_v56 = vpop.f32.mrb[2].mxu0  ;;  %v1094_v8 = vadd.f32 %v1093_v55, %v968_v5  ;;  %v3051_v55 = vld [vmem:[#allocation14 + $0x18] sm:$0xff]  }
 0x253   : > { %v1096_v57 = vadd.f32 %v1095_v56, %v964_v52  ;;  %v1097_v58 = vpop.f32.mrb[3].mxu0  ;;  %v1100_v59 = vmax.f32 %v1092_v54, 0.0  ;;  %v3048_v52 = vld [vmem:[#allocation14] sm:$0xff]   ;;  %v3050_v54 = vld [vmem:[#allocation14 + $0x10] sm:$0xff]  }
 0x254   : > { %v1098_v12 = vadd.f32 %v1097_v58, %v968_v5  ;;  %v3052_v56 = vld [vmem:[#allocation14 + $0x20] sm:$0xff]  }
 0x255   : > { %v1101_v60 = vmax.f32 %v1096_v57, 0.0  ;;  %v3053_v57 = vld [vmem:[#allocation14 + $0x28] sm:$0xff]  }
 0x257   : > { %v1102_v61 = vpack.c.bf16 %v1101_v60, %v1100_v59 }
 0x259   : > { %2625 = vmatmul.mubr.bf16.vlgmr.msra.gmra.mrb[0].mxu1 %v1102_v61 }
 0x25a   : > { %2773 = vmatpush3.bf16.msra.mxu1 %v2738_v29  ;;  %v3014_v29 = vld [vmem:[#allocation13 + $0x50] ss:$8 sps:$4 sm:$0xff]  }
 0x25b   : > { %2775 = vmatprep.subr.bf16.mxu1 %v2742_v32 }
 0x25e   : > { %2777 = vmatpush3.bf16.msra.mxu1 %v2742_v32  ;;  %v3022_v32 = vld [vmem:[#allocation13 + $0x74] ss:$8 sps:$4 sm:$0xff]  }
 0x25f   : > { %2779 = vmatprep.subr.bf16.mxu1 %v2746_v35 }
 0x262   : > { %2781 = vmatpush3.bf16.msra.mxu1 %v2746_v35  ;;  %v3026_v35 = vld [vmem:[#allocation5] sm:$0xff]  }
 0x263   : > { %2783 = vmatprep.subr.bf16.mxu1 %v2750_v38 }
 0x266   : > { %2785 = vmatpush3.bf16.msra.mxu1 %v2750_v38  ;;  %v3027_v38 = vld [vmem:[#allocation11 + $0x10] ss:$8 sps:$4 sm:$0xff]  }
 0x267   : > { %2787 = vmatprep.subr.bf16.mxu1 %v2754_v41 }
 0x26a   : > { %2789 = vmatpush3.bf16.msra.mxu1 %v2754_v41  ;;  %v3035_v41 = vld [vmem:[#allocation11 + $0x34] ss:$8 sps:$4 sm:$0xff]  }
 0x26b   : > { %2791 = vmatprep.subr.bf16.mxu1 %v2758_v44 }
 0x26e   : > { %2793 = vmatpush3.bf16.msra.mxu1 %v2758_v44  ;;  %v3036_v44 = vld [vmem:[#allocation11 + $0x40] ss:$8 sps:$4 sm:$0xff]  }
 0x26f   : > { %2795 = vmatprep.subr.bf16.mxu1 %v2762_v47 }
 0x272   : > { %2797 = vmatpush3.bf16.msra.mxu1 %v2762_v47  ;;  %v3044_v47 = vld [vmem:[#allocation11 + $0x64] ss:$8 sps:$4 sm:$0xff]  }
 0x273   : > { %2799 = vmatprep.subr.bf16.mxu1 %v2766_v0 }
 0x276   : > { %2801 = vmatpush3.bf16.msra.mxu1 %v2766_v0 }
 0x277   : > { %2698 = vmatprep.subr.bf16.mxu1 %v3501_v3 }
 0x32c   : > { %v1208_v7 = vpop.f32.mrb[0].mxu1 }
 0x32d   : > { %v1209_v9 = vadd.f32 %v2457_v6, %v1208_v7  ;;  %v2626_v10 = vpop.f32.mrb[1].mxu1 }
 0x32e   : > { %v1211_v11 = vpop.f32.mrb[2].mxu1  ;;  %v2466_v10 = vld [vmem:[%s4299_s9] ss:$0 sm:$0xff]  ;;  %s4304_s9 = sld [smem:[#allocation42_spill]] }
 0x32f   : > { %v4058_v13 = vadd.f32 %v1209_v9, %v1094_v8  ;;  %v1212_v14 = vadd.f32 %v2457_v6, %v1211_v11  ;;  %v2627_v15 = vpop.f32.mrb[3].mxu1 }
 0x330   : > { %v2467_v15 = vld [vmem:[%s4300_s17] ss:$0 sm:$0xff] }
 0x331   : > { %v4060_v17 = vadd.f32 %v1212_v14, %v1098_v12  ;;  %2660 = vmatprep.mubr.f32.mxu0 %v4058_v13  ;;  %v1308_v18 = vmul.f32 %v4058_v13, %v4058_v13 }
 0x333   : > { %v1309_v20 = vmul.f32 %v4060_v17, %v4060_v17  ;;  %2661 = vmatmul.mubr.f32.vlgmr.msra.gmra.mrb[4].mxu0 %v4060_v17  ;;  %2695 = vmatprep.mubr.f32.mxu1 %v1308_v18 }
 0x334   : > { %1537 = vmatpush1.bf16.msra.mxu0 %v2999_v16  ;;  %1568 = vmatprep.mubr.bf16.mxu0 %v3500_v2 }
 0x335   : > { %2696 = vmatmul.mubr.f32.vlgmr.msra.gmra.mrb[4].mxu1 %v1309_v20  ;;  %1538 = vmatprep.subr.bf16.mxu0 %v3004_v19 }
 0x336   : > { %2714 = vmatprep.mubr.msk.bf16.mxu1 %vm3502_vm0, %v3501_v3  ;;  %2699 = vmatpush3.bf16.msra.mxu1 %v3048_v52 }
 0x337   : > { %2700 = vmatprep.subr.bf16.mxu1 %v3501_v3 }
 0x338   : > { %1539 = vmatpush1.bf16.msra.mxu0 %v3002_v21 }
 0x339   : > { %1540 = vmatprep.subr.bf16.mxu0 %v3007_v22  ;;  %v1702_v22 = vld [vmem:[%s4301_s21] sm:$0x3] }
 0x33a   : > { %2701 = vmatpush3.bf16.msra.mxu1 %v3049_v53 }
 0x33b   : > { %2702 = vmatprep.subr.bf16.mxu1 %v3501_v3 }
 0x33c   : > { %1541 = vmatpush1.bf16.msra.mxu0 %v3005_v23  ;;  %v1707_v23 = vrot.slane %v1702_v22, %v963_v50 }
 0x33d   : > { %1542 = vmatprep.subr.bf16.mxu0 %v3010_v24  ;;  %v1711_v24 = vrot.slane %v1702_v22, %v967_v4 }
 0x33e   : > { %2703 = vmatpush3.bf16.msra.mxu1 %v3050_v54 }
 0x33f   : > { %2704 = vmatprep.subr.bf16.mxu1 %v3501_v3 }
 0x340   : > { %1543 = vmatpush1.bf16.msra.mxu0 %v3008_v25 }
 0x341   : > { %1544 = vmatprep.subr.bf16.mxu0 %v3013_v26 }
 0x342   : > { %2705 = vmatpush3.bf16.msra.mxu1 %v3051_v55 }
 0x343   : > { %2706 = vmatprep.subr.bf16.mxu1 %v3501_v3 }
 0x344   : > { %1545 = vmatpush1.bf16.msra.mxu0 %v3011_v27 }
 0x345   : > { %1546 = vmatprep.subr.bf16.mxu0 %v3016_v28 }
 0x346   : > { %2707 = vmatpush3.bf16.msra.mxu1 %v3052_v56 }
 0x347   : > { %2708 = vmatprep.subr.bf16.mxu1 %v3501_v3 }
 0x348   : > { %1547 = vmatpush1.bf16.msra.mxu0 %v3014_v29 }
 0x349   : > { %1548 = vmatprep.subr.bf16.mxu0 %v3019_v30 }
 0x34a   : > { %2709 = vmatpush3.bf16.msra.mxu1 %v3053_v57 }
 0x34b   : > { %2710 = vmatprep.subr.bf16.mxu1 %v3501_v3 }
 0x34c   : > { %1549 = vmatpush1.bf16.msra.mxu0 %v3017_v31 }
 0x34d   : > { %1550 = vmatprep.subr.bf16.mxu0 %v3022_v32 }
 0x350   : > { %1551 = vmatpush1.bf16.msra.mxu0 %v3020_v33 }
 0x351   : > { %1659 = vmatprep.subr.bf16.mxu0 %v3025_v34 }
 0x353   : > { %1569 = vmatmul.mubr.bf16.vlgmr.msra.gmra.mrb[8].mxu0 %v3026_v35  ;;  %v2501_v35 = vld [vmem:[%s4302_s3] ss:$0 sm:$0xff] }
 0x354   : > { %1660 = vmatpush1.bf16.msra.mxu0 %v3023_v36  ;;  %1691 = vmatprep.mubr.bf16.mxu0 %v3500_v2  ;;  %v3042_v2 = vld [vmem:[#allocation11 + $0x60] ss:$8 sps:$4 sm:$0xff]  }
 0x355   : > { %1661 = vmatprep.subr.bf16.mxu0 %v3029_v37 }
 0x358   : > { %1662 = vmatpush1.bf16.msra.mxu0 %v3027_v38 }
 0x359   : > { %1663 = vmatprep.subr.bf16.mxu0 %v3032_v39 }
 0x35c   : > { %1664 = vmatpush1.bf16.msra.mxu0 %v3030_v40 }
 0x35d   : > { %1665 = vmatprep.subr.bf16.mxu0 %v3035_v41 }
 0x360   : > { %1666 = vmatpush1.bf16.msra.mxu0 %v3033_v42 }
 0x361   : > { %1667 = vmatprep.subr.bf16.mxu0 %v3038_v43 }
 0x364   : > { %1668 = vmatpush1.bf16.msra.mxu0 %v3036_v44 }
 0x365   : > { %1669 = vmatprep.subr.bf16.mxu0 %v3041_v45 }
 0x368   : > { %1670 = vmatpush1.bf16.msra.mxu0 %v3039_v46 }
 0x369   : > { %1671 = vmatprep.subr.bf16.mxu0 %v3044_v47 }
 0x36c   : > { %1672 = vmatpush1.bf16.msra.mxu0 %v3042_v2 }
 0x36d   : > { %1673 = vmatprep.subr.bf16.mxu0 %v3047_v48 }
 0x370   : > { %1674 = vmatpush1.bf16.msra.mxu0 %v3045_v51 }
 0x406   : > { %v2662_v58 = vpop.f32.mrb[4].mxu0 }
 0x407   : > { %v1386_v59 = vmul.f32 %v2662_v58, %v2662_v58  ;;  %v1299_v60 = vpop.f32.mrb[5].mxu0  ;;  %v1390_v7 = vsub.f32 %v4060_v17, %v2662_v58  ;;  %v3054_v17 = vld [vmem:[#allocation14 + $0x30] sm:$0xff]  }
 0x408   : > { %v1385_v61 = vmul.f32 %v1299_v60, %v1299_v60  ;;  %v2697_v62 = vpop.f32.mrb[4].mxu1  ;;  %v1389_v9 = vsub.f32 %v4058_v13, %v1299_v60  ;;  %2711 = vmatpush3.bf16.msra.mxu1 %v3054_v17  ;;  %v3055_v13 = vld [vmem:[#allocation14 + $0x38] sm:$0xff]   ;;  %v2510_v60 = vld [vmem:[%s4303_s6] ss:$0 sm:$0xff] }
 0x409   : > { %v1388_v63 = vsub.f32 %v2697_v62, %v1386_v59  ;;  %v1376_v0 = vpop.f32.mrb[5].mxu1  ;;  %2712 = vmatprep.subr.bf16.mxu1 %v3501_v3  ;;  %v2511_v62 = vld [vmem:[%s4304_s9] ss:$0 sm:$0xff] }
 0x40a   : > { %v1387_v1 = vsub.f32 %v1376_v0, %v1385_v61 }
 0x40b   : > { %v1392_v5 = vadd.f32 1e-05, %v1388_v63 }
 0x40c   : > { %v1391_v6 = vadd.f32 1e-05, %v1387_v1  ;;  %2713 = vmatpush3.bf16.msra.mxu1 %v3055_v13 }
 0x40d   : > { %3056 = vrsqrt.f32 %v1392_v5 }
 0x40e   : > { %3058 = vrsqrt.f32 %v1391_v6 }
 0x417   : > { %v3057_v8 = vpop.eup %3056 }
 0x418   : > { %v3059_v11 = vpop.eup %3058  ;;  %v1396_v12 = vmul.f32 %v3057_v8, %v1390_v7 }
 0x419   : > { %v1395_v14 = vmul.f32 %v3059_v11, %v1389_v9 }
 0x41a   : > { %v1405_v16 = vmul.f32 %v2466_v10, %v1396_v12 }
 0x41b   : > { %v1404_v18 = vmul.f32 %v2466_v10, %v1395_v14 }
 0x41c   : > { %v1414_v19 = vadd.f32 %v2467_v15, %v1405_v16 }
 0x41d   : > { %v1413_v20 = vadd.f32 %v2467_v15, %v1404_v18 }
 0x41f   : > { %v1415_v21 = vpack.c.bf16 %v1414_v19, %v1413_v20 }
 0x421   : > { %1692 = vmatmul.mubr.bf16.vlgmr.msra.gmra.mrb[8].mxu0 %v1415_v21 }
 0x4f4   : > { %v1693_v25 = vpop.f32.mrb[8].mxu0 }
 0x4f5   : > { %v1714_v26 = vadd.f32 %v1707_v23, %v1693_v25  ;;  %v1695_v27 = vpop.f32.mrb[9].mxu0 }
 0x4f6   : > { %v1715_v28 = vadd.f32 %v1711_v24, %v1695_v27  ;;  %v1697_v29 = vpop.f32.mrb[10].mxu0 }
 0x4f7   : > { %v1716_v30 = vadd.f32 %v1707_v23, %v1697_v29  ;;  %v1699_v31 = vpop.f32.mrb[11].mxu0  ;;  %v1718_v32 = vmax.f32 %v1714_v26, 0.0 }
 0x4f8   : > { %v1717_v3 = vadd.f32 %v1711_v24, %v1699_v31 }
 0x4f9   : > { %v1719_v33 = vmax.f32 %v1716_v30, 0.0 }
 0x4fb   : > { %v1720_v34 = vpack.c.bf16 %v1719_v33, %v1718_v32 }
 0x4fd   : > { %2715 = vmatmul.mubr.bf16.vlgmr.msra.gmra.mrb[8].mxu1 %v1720_v34 }
 0x5d0   : > { %v1826_v50 = vpop.f32.mrb[8].mxu1 }
 0x5d1   : > { %v1827_v36 = vadd.f32 %v2501_v35, %v1826_v50  ;;  %v2716_v49 = vpop.f32.mrb[9].mxu1 }
 0x5d2   : > { %v1829_v4 = vpop.f32.mrb[10].mxu1 }
 0x5d3   : > { %v1833_v37 = vadd.f32 %v1827_v36, %v1715_v28  ;;  %v1830_v38 = vadd.f32 %v2501_v35, %v1829_v4  ;;  %v2717_v39 = vpop.f32.mrb[11].mxu1 }
 0x5d5   : > { %v1834_v40 = vadd.f32 %v1830_v38, %v1717_v3  ;;  %1837 = vadd.xlane.f32.xlu0 %v1833_v37  ;;  %v1843_v41 = vmul.f32 %v1833_v37, %v1833_v37 }
 0x5d7   : > { %1845 = vadd.xlane.f32.xlu1 %v1843_v41  ;;  %v1844_v42 = vmul.f32 %v1834_v40, %v1834_v40 }
 0x5d9   : > { %1839 = vadd.xlane.f32.xlu0 %v1834_v40 }
 0x5db   : > { %1847 = vadd.xlane.f32.xlu1 %v1844_v42 }
 0x662   : > { %v1838_v43 = vpop.xlane.xlu0 %1837 }
 0x663   : > { %v1841_v44 = vmul.f32 0.03125, %v1838_v43 }
 0x664   : > { %v1846_v45 = vpop.xlane.xlu1 %1845 }
 0x665   : > { %v1851_v46 = vmul.f32 %v1841_v44, %v1841_v44  ;;  %v1849_v47 = vmul.f32 0.03125, %v1846_v45  ;;  %v1855_v58 = vsub.f32 %v1833_v37, %v1841_v44 }
 0x666   : > { %v1840_v2 = vpop.xlane.xlu0 %1839 }
 0x667   : > { %v1853_v48 = vsub.f32 %v1849_v47, %v1851_v46  ;;  %v1842_v51 = vmul.f32 0.03125, %v1840_v2 }
 0x668   : > { %v1848_v52 = vpop.xlane.xlu1 %1847 }
 0x669   : > { %v1857_v53 = vadd.f32 1e-05, %v1853_v48  ;;  %v1852_v54 = vmul.f32 %v1842_v51, %v1842_v51  ;;  %v1850_v55 = vmul.f32 0.03125, %v1848_v52  ;;  %v1856_v0 = vsub.f32 %v1834_v40, %v1842_v51 }
 0x66b   : > { %3060 = vrsqrt.f32 %v1857_v53  ;;  %v1854_v56 = vsub.f32 %v1850_v55, %v1852_v54 }
 0x66d   : > { %v1858_v57 = vadd.f32 1e-05, %v1854_v56 }
 0x66f   : > { %3062 = vrsqrt.f32 %v1858_v57 }
 0x675   : > { %v3061_v59 = vpop.eup %3060 }
 0x676   : > { %v1861_v61 = vmul.f32 %v3061_v59, %v1855_v58 }
 0x678   : > { %v1869_v63 = vmul.f32 %v2510_v60, %v1861_v61 }
 0x679   : > { %v3063_v1 = vpop.eup %3062 }
 0x67a   : > { %v1877_v5 = vadd.f32 %v2511_v62, %v1869_v63  ;;  %v1862_v6 = vmul.f32 %v3063_v1, %v1856_v0 }
 0x67c   : > { %1879 = vst [vmem:[#allocation18] sm:$0xff] %v1877_v5  ;;  %v1870_v7 = vmul.f32 %v2510_v60, %v1862_v6 }
 0x67e   : > { %v1878_v8 = vadd.f32 %v2511_v62, %v1870_v7 }
 0x680   : > { %1880 = vst [vmem:[#allocation18 + $0x8] sm:$0xff] %v1878_v8 }
 0x681 PF: > { %v3064_v9 = vld [vmem:[%s4001_s20 + $0x4] ss:$8 sps:$4 sm:$0xff]   ;;  %v3066_v10 = vld [vmem:[%s4001_s20] ss:$8 sps:$4 sm:$0xff]   ;;  %v3503_v11 = vmov 0   ;;  %v3504_v12 = vmov 0.0   ;;  %v1902_v36 = vlaneseq }
 0x682   : > { %2024 = vmatprep.mubr.bf16.mxu0 %v3503_v11  ;;  %2718 = vmatprep.subr.bf16.mxu1 %v3504_v12  ;;  %v3067_v14 = vld [vmem:[%s4001_s20 + $0x14] ss:$8 sps:$4 sm:$0xff]   ;;  %v3069_v15 = vld [vmem:[%s4001_s20 + $0x10] ss:$8 sps:$4 sm:$0xff]   ;;  %v3070_v16 = vld [vmem:[%s4001_s20 + $0x24] ss:$8 sps:$4 sm:$0xff]  }
 0x683   : > { %1992 = vmatprep.subr.bf16.mxu0 %v3064_v9  ;;  %v3072_v18 = vld [vmem:[%s4001_s20 + $0x20] ss:$8 sps:$4 sm:$0xff]   ;;  %v3073_v19 = vld [vmem:[%s4001_s20 + $0x34] ss:$8 sps:$4 sm:$0xff]   ;;  %v3075_v20 = vld [vmem:[%s4001_s20 + $0x30] ss:$8 sps:$4 sm:$0xff]  }
 0x684   : > { %1993 = vmatpush1.bf16.msra.mxu0 %v3066_v10  ;;  %v3076_v21 = vld [vmem:[%s4001_s20 + $0x44] ss:$8 sps:$4 sm:$0xff]   ;;  %v3078_v22 = vld [vmem:[%s4001_s20 + $0x40] ss:$8 sps:$4 sm:$0xff]   ;;  %v3079_v23 = vld [vmem:[%s4001_s20 + $0x54] ss:$8 sps:$4 sm:$0xff]  }
 0x685   : > { %1994 = vmatprep.subr.bf16.mxu0 %v3067_v14  ;;  %v3088_v17 = vld [vmem:[%s4029_s2] sm:$0xff]   ;;  %v3089_v13 = vld [vmem:[%s4029_s2 + $0x8] sm:$0xff]   ;;  %v3090_v24 = vld [vmem:[%s4029_s2 + $0x10] sm:$0xff]   ;;  %vm3505_vm1 = vmmov 0   ;;  %v1903_v49 = vshrl.u32 %v1902_v36, 7  ;;  %s3506_s21 = smov [#allocation18]  }
 0x686   : > { %2719 = vmatpush3.bf16.msra.mxu1 %v3088_v17  ;;  %v3081_v25 = vld [vmem:[%s4001_s20 + $0x50] ss:$8 sps:$4 sm:$0xff]   ;;  %v3082_v26 = vld [vmem:[%s4001_s20 + $0x64] ss:$8 sps:$4 sm:$0xff]   ;;  %v3084_v28 = vld [vmem:[%s4001_s20 + $0x60] ss:$8 sps:$4 sm:$0xff]   ;;  %2734 = vmatprep.mubr.msk.bf16.mxu1 %vm3505_vm1, %v3504_v12 }
 0x687   : > { %2720 = vmatprep.subr.bf16.mxu1 %v3504_v12  ;;  %v3091_v27 = vld [vmem:[%s4029_s2 + $0x18] sm:$0xff]   ;;  %v3092_v30 = vld [vmem:[%s4029_s2 + $0x20] sm:$0xff]   ;;  %v1882_v32 = vld [vmem:[#allocation18 + $0x8] sm:$0xff]  ;;  %v1904_v4 = vsub.s32 0, %v1903_v49  ;;  %v1908_v2 = vsub.s32 1, %v1903_v49  ;;  %s2207_s30 = sshll.u32 %s3506_s21, 4  ;;  %s2208_s30 = int_to_ptr.vmem [resolvable:$true] %s2207_s30 }
 0x688   : > { %1995 = vmatpush1.bf16.msra.mxu0 %v3069_v15  ;;  %v3085_v29 = vld [vmem:[%s4001_s20 + $0x74] ss:$8 sps:$4 sm:$0xff]   ;;  %v3087_v31 = vld [vmem:[%s4001_s20 + $0x70] ss:$8 sps:$4 sm:$0xff]   ;;  %v1881_v3 = vld [vmem:[#allocation18] sm:$0xff]  ;;  %p2895_p5 = scmp.eq.s32.totalorder %s3655_s23, 1  ;;  %p3391_p1 = scmp.lt.s32.totalorder %s2208_s30, %s2208_s30 }
 0x689   : > { %1996 = vmatprep.subr.bf16.mxu0 %v3070_v16  ;;  %v1883_v33 = vpack.c.bf16 %v1882_v32, %v1881_v3  ;;  %v3093_v34 = vld [vmem:[%s4029_s2 + $0x28] sm:$0xff]   ;;  %v3094_v35 = vld [vmem:[%s4029_s2 + $0x30] sm:$0xff]   ;;  %v3095_v50 = vld [vmem:[%s4029_s2 + $0x38] sm:$0xff]  }
 0x68a   : > { %2721 = vmatpush3.bf16.msra.mxu1 %v3089_v13  ;;  %v1900_v37 = vld [vmem:[%s4019_s11] sm:$0x3] }
 0x68b   : > { %2722 = vmatprep.subr.bf16.mxu1 %v3504_v12  ;;  %v1905_v38 = vrot.slane %v1900_v37, %v1904_v4  ;;  %v1909_v48 = vrot.slane %v1900_v37, %v1908_v2  ;;  %v2528_v51 = vld [vmem:[%s928_s22] ss:$0 sm:$0xff] }
 0x68c   : > { %1997 = vmatpush1.bf16.msra.mxu0 %v3072_v18  ;;  %v2538_v13 = vld [vmem:[%s934_s13] ss:$0 sm:$0xff] }
 0x68d   : > { %1998 = vmatprep.subr.bf16.mxu0 %v3073_v19 }
 0x68e   : > { %2723 = vmatpush3.bf16.msra.mxu1 %v3090_v24 }
 0x68f   : > { %2724 = vmatprep.subr.bf16.mxu1 %v3504_v12 }
 0x690   : > { %1999 = vmatpush1.bf16.msra.mxu0 %v3075_v20 }
 0x691   : > { %2000 = vmatprep.subr.bf16.mxu0 %v3076_v21  ;;  %v2537_v21 = vld [vmem:[%s931_s0] ss:$0 sm:$0xff]  ;;  %s3384_s0 = scalar_lea.vmem %s2208_s30, 256 }
 0x692   : > { %2725 = vmatpush3.bf16.msra.mxu1 %v3091_v27  ;;  %p3385_p4 = scmp.ne.s32.totalorder %s2208_s30, %s3384_s0  ;;  %p3392_p11 = scmp.lt.s32.totalorder %s3384_s0, %s3384_s0 }
 0x693   : > { %2726 = vmatprep.subr.bf16.mxu1 %v3504_v12 }
 0x694   : > { %2001 = vmatpush1.bf16.msra.mxu0 %v3078_v22  ;;  %p3386_p6 = pnand %p3385_p4, %p2895_p5  ;;  %p3393_p10 = por %p3392_p11, %p3391_p1 }
 0x695   : > { %2002 = vmatprep.subr.bf16.mxu0 %v3079_v23 }
 0x696   : > { %2727 = vmatpush3.bf16.msra.mxu1 %v3092_v30  ;;  %p3387_p9 = pneg %p3386_p6 }
 0x697   : > { %2728 = vmatprep.subr.bf16.mxu1 %v3504_v12 }
 0x698   : > { %2003 = vmatpush1.bf16.msra.mxu0 %v3081_v25  ;;  %p3394_p12 = pnand %p3393_p10, %p3387_p9 }
 0x699   : > { %2004 = vmatprep.subr.bf16.mxu0 %v3082_v26 }
 0x69a   : > { %2729 = vmatpush3.bf16.msra.mxu1 %v3093_v34 }
 0x69b   : > { %2730 = vmatprep.subr.bf16.mxu1 %v3504_v12 }
 0x69c   : > { %2005 = vmatpush1.bf16.msra.mxu0 %v3084_v28 }
 0x69d   : > { %2006 = vmatprep.subr.bf16.mxu0 %v3085_v29 }
 0x69e   : > { %2731 = vmatpush3.bf16.msra.mxu1 %v3094_v35 }
 0x69f   : > { %2732 = vmatprep.subr.bf16.mxu1 %v3504_v12 }
 0x6a0   : > { %2007 = vmatpush1.bf16.msra.mxu0 %v3087_v31 }
 0x6a2   : > { %2733 = vmatpush3.bf16.msra.mxu1 %v3095_v50 }
 0x6a3   : > { %2025 = vmatmul.mubr.bf16.vlgmr.msra.gmra.mrb[0].mxu0 %v1883_v33 }
 0x776   : > { %v2026_v39 = vpop.f32.mrb[0].mxu0 }
 0x777   : > { %v2027_v40 = vadd.f32 %v2026_v39, %v1905_v38  ;;  %v2028_v41 = vpop.f32.mrb[1].mxu0 }
 0x778   : > { %v2030_v42 = vpop.f32.mrb[2].mxu0  ;;  %v2029_v53 = vadd.f32 %v2028_v41, %v1909_v48 }
 0x779   : > { %v2031_v43 = vadd.f32 %v2030_v42, %v1905_v38  ;;  %v2032_v44 = vpop.f32.mrb[3].mxu0  ;;  %v2035_v45 = vmax.f32 %v2027_v40, 0.0 }
 0x77a   : > { %v2033_v57 = vadd.f32 %v2032_v44, %v1909_v48 }
 0x77b   : > { %v2036_v46 = vmax.f32 %v2031_v43, 0.0 }
 0x77d   : > { %v2037_v47 = vpack.c.bf16 %v2036_v46, %v2035_v45 }
 0x77f   : > { %2735 = vmatmul.mubr.bf16.vlgmr.msra.gmra.mrb[0].mxu1 %v2037_v47 }
 0x852   : > { %v2143_v52 = vpop.f32.mrb[0].mxu1 }
 0x853   : > { %v2144_v54 = vadd.f32 %v2528_v51, %v2143_v52  ;;  %v2736_v55 = vpop.f32.mrb[1].mxu1 }
 0x854   : > { %v2146_v56 = vpop.f32.mrb[2].mxu1 }
 0x855   : > { %v2150_v58 = vadd.f32 %v2144_v54, %v2029_v53  ;;  %v2147_v59 = vadd.f32 %v2528_v51, %v2146_v56  ;;  %v2737_v60 = vpop.f32.mrb[3].mxu1 }
 0x857   : > { %v2151_v61 = vadd.f32 %v2147_v59, %v2033_v57  ;;  %2154 = vadd.xlane.f32.xlu0 %v2150_v58  ;;  %v2160_v62 = vmul.f32 %v2150_v58, %v2150_v58 }
 0x859   : > { %2162 = vadd.xlane.f32.xlu1 %v2160_v62  ;;  %v2161_v63 = vmul.f32 %v2151_v61, %v2151_v61 }
 0x85b   : > { %2156 = vadd.xlane.f32.xlu0 %v2151_v61 }
 0x85d   : > { %2164 = vadd.xlane.f32.xlu1 %v2161_v63 }
 0x8e4   : > { %v2155_v0 = vpop.xlane.xlu0 %2154 }
 0x8e5   : > { %v2158_v1 = vmul.f32 0.03125, %v2155_v0 }
 0x8e6   : > { %v2163_v5 = vpop.xlane.xlu1 %2162 }
 0x8e7   : > { %v2168_v6 = vmul.f32 %v2158_v1, %v2158_v1  ;;  %v2166_v7 = vmul.f32 0.03125, %v2163_v5  ;;  %v2172_v19 = vsub.f32 %v2150_v58, %v2158_v1 }
 0x8e8   : > { %v2157_v8 = vpop.xlane.xlu0 %2156 }
 0x8e9   : > { %v2170_v9 = vsub.f32 %v2166_v7, %v2168_v6  ;;  %v2159_v10 = vmul.f32 0.03125, %v2157_v8 }
 0x8ea   : > { %v2165_v11 = vpop.xlane.xlu1 %2164 }
 0x8eb   : > { %v2174_v12 = vadd.f32 1e-05, %v2170_v9  ;;  %v2169_v14 = vmul.f32 %v2159_v10, %v2159_v10  ;;  %v2167_v15 = vmul.f32 0.03125, %v2165_v11  ;;  %v2173_v22 = vsub.f32 %v2151_v61, %v2159_v10 }
 0x8ed   : > { %3096 = vrsqrt.f32 %v2174_v12  ;;  %v2171_v16 = vsub.f32 %v2167_v15, %v2169_v14 }
 0x8ef   : > { %v2175_v18 = vadd.f32 1e-05, %v2171_v16 }
 0x8f1   : > { %3098 = vrsqrt.f32 %v2175_v18 }
 0x8f7   : > { %v3097_v20 = vpop.eup %3096 }
 0x8f8   : > { %v2178_v17 = vmul.f32 %v3097_v20, %v2172_v19 }
 0x8fa   : > { %v2186_v23 = vmul.f32 %v2537_v21, %v2178_v17 }
 0x8fb   : > { %v3099_v24 = vpop.eup %3098 }
 0x8fc   : > { %v2179_v25 = vmul.f32 %v3099_v24, %v2173_v22  ;;  %v2194_v26 = vadd.f32 %v2538_v13, %v2186_v23 }
 0x8fe   : > { %v2187_v27 = vmul.f32 %v2537_v21, %v2179_v25  ;;  %2196 = vst [vmem:[#allocation18] sm:$0xff] %v2194_v26 }
 0x900   : > { %v2195_v28 = vadd.f32 %v2538_v13, %v2187_v27 }
 0x902   : > { %2197 = vst [vmem:[#allocation18 + $0x8] sm:$0xff] %v2195_v28 }
 0x903   : > { %3397 = shalt.err (!%p3394_p12)
}
 0x904   : > { %s4308_s8 = sld [smem:[#allocation48_spill]] }
 0x90a   : > { %s3398_s3 = scalar_lea.hbm %s4308_s8, 256 }
 0x90b   : > { %p3399_p13 = scmp.ne.s32.totalorder %s4308_s8, %s3398_s3  ;;  %p3404_p2 = scmp.lt.u32.totalorder %s3398_s3, %s4308_s8 }
 0x90d   : > { %p3400_p7 = pnand %p3399_p13, %p2895_p5 }
 0x90f   : > { %p3401_p8 = pneg %p3400_p7 }
 0x911   : > { %p3406_p3 = pnand %p3404_p2, %p3401_p8 }
 0x913   : > { %3409 = shalt.err (!%p3406_p3)
}
 0x914   : > { %s3507_s7 = smov 128   ;;  %s3508_s9 = smov 8  }
 0x915   : > { %2843 = dma.vmem_to_hbm [thread:$0]  (%p2895_p5), %s2208_s30, 256, %s4308_s8, [#allocation4], %s3507_s7, %s3507_s7, %s3508_s9  }
 0x916   : > { %3459 = dma.done.wait (%p2895_p5), [#allocation4], 256  }
 0x917   : > { %3461 = vsyncadd (%p2895_p5), [#allocation4], 4294967040 }
 0x918 PF: > { %s4309_s5 = sld [smem:[#allocation26_spill]]  ;;  %s4310_s22 = sld [smem:[#allocation28_spill]] }
 0x919   : > { %s4311_s11 = sld [smem:[#allocation27_spill]]  ;;  %s4312_s3 = smov %s3468_s28 }
 0x91a   : > { %s4313_s28 = smov %s3472_s29  ;;  %s4315_s30 = smov %s3480_s4 }
 0x91e   : > { %s38_s0 = sadd.s32 1, %s4309_s5   ;;  %s4314_s29 = smov %s4310_s22 }
 0x91f   : > { %p35_p0 = scmp.ge.s32.totalorder %s38_s0, 4   ;;  %s4316_s4 = smov %s4311_s11 }
 0x921   :  { %37 = sbr.rel (!%p35_p0) target bundleno = 29 (0x1d), region = 206 }
 0x928   :  { %2223 = vsyncpa [#allocation3], 1 }
 0x929   :  { %2225 = vsyncpa [#allocation3 + $0x1], 1 }
 0x92a   :  { %2226 = vsyncpa [#allocation6], 1 }
 0x92b   :  { %2227 = vsyncpa [#allocation9], 1 }
 0x92c   :  { %2228 = vsyncpa [#allocation12], 1 }
 0x92d   :  { %2229 = vsyncpa [#allocation15], 1 }
 0x92e   :  { %2230 = vsyncpa [#allocation4], 1 }
 0x92f   :  { %2232 = vsyncpa [#allocation4 + $0x1], 1 }

</bundles_post_ra>
